<compile_context>
chip_gen: v6e
topology: v6e:2x2x1
jax: 0.10.0
libtpu: 0.0.40
codegen_flags: <defaults>
</compile_context>

<pallas_src>
import jax
import jax.numpy as jnp
from jax.experimental import pallas as pl
from jax.experimental.pallas import tpu as pltpu

# ------------------------------ model dimensions -----------------------------
VOCAB = 64
B = 2              # batch
S = 8              # sequence length (premise + hypothesis)
H = 32             # hidden size
NH = 4             # attention heads
HD = H // NH       # head dim
FF = 64            # FFN intermediate size
N_LAYERS = 2
N_LABELS = 3       # contradiction / neutral / entailment
N_PAD = 128        # lane-dense output width (logits + fused entailment prob)
ENT_COL = 4        # output lane carrying p(entailment) for get_entailment_score
EPS = 1e-5
BS = B * S

# Row layout of the packed "tables" operand (embeddings + all LayerNorm vectors)
R_POS = VOCAB                       # S rows of positional embeddings
R_TYPE = VOCAB + S                  # 2 rows of token-type embeddings
R_EMB_LN = R_TYPE + 2               # embedding LN gamma, beta
R_LN = R_EMB_LN + 2                 # per layer: g1, b1, g2, b2 (4 rows each)
N_TAB_ROWS = R_LN + 4 * N_LAYERS    # = 84

# Advisory cost estimate (static)
FLOPS = (2 * BS * VOCAB * H
         + N_LAYERS * (2 * BS * H * 3 * H
                       + NH * (2 * BS * HD * BS + 2 * BS * BS * HD + 2 * BS * HD * H)
                       + 4 * BS * H * FF)
         + 2 * B * H * H + 2 * B * H * N_PAD)
TRANSCENDENTALS = N_LAYERS * (NH * BS * BS + BS * FF + 3 * BS) + BS + B * H + 2 * B


def _layernorm(x, gamma, beta):
    mean = jnp.mean(x, axis=-1, keepdims=True)
    var = jnp.mean((x - mean) ** 2, axis=-1, keepdims=True)
    return (x - mean) * jax.lax.rsqrt(var + EPS) * gamma + beta


# ------------------------------ fused forward kernel -------------------------

def _nli_fused_kernel(ids_ref, tab_ref, wqkvb_ref, wob_ref, w1b_ref, w2b_ref,
                      cls_wdb_ref, cls_head_ref, out_ref):
    # ---- fused embedding lookup (one-hot MXU matmul; replaces the XLA gather)
    ids = ids_ref[...]                                  # (BS, 2) int32
    tok = ids[:, 0:1]                                   # token id
    typ = ids[:, 1:2].astype(jnp.float32)               # token-type id (0/1)

    vocab_iota = jax.lax.broadcasted_iota(jnp.int32, (BS, VOCAB), 1)
    onehot = (tok == vocab_iota).astype(jnp.float32)
    word = jnp.dot(onehot, tab_ref[0:VOCAB, :], preferred_element_type=jnp.float32)

    pos = jnp.concatenate([tab_ref[R_POS:R_POS + S, :]] * B, axis=0)      # (BS, H)

    t0 = tab_ref[R_TYPE:R_TYPE + 1, :]
    t1 = tab_ref[R_TYPE + 1:R_TYPE + 2, :]
    type_vec = t0 * (1.0 - typ) + t1 * typ                                # (BS, H)

    x = _layernorm(word + pos + type_vec,
                   tab_ref[R_EMB_LN:R_EMB_LN + 1, :],
                   tab_ref[R_EMB_LN + 1:R_EMB_LN + 2, :])                 # (BS, H)

    # Block-diagonal attention bias over the flattened batch, computed once and
    # reused by every layer/head (scores are computed on the flat (BS, BS)
    # matrix, so the attention core needs no reshapes / transposes at all).
    row = jax.lax.broadcasted_iota(jnp.int32, (BS, BS), 0)
    col = jax.lax.broadcasted_iota(jnp.int32, (BS, BS), 1)
    attn_bias = jnp.full((BS, BS), -1e30, jnp.float32)
    for b in range(B):
        in_blk = ((row >= b * S) & (row < (b + 1) * S)
                  & (col >= b * S) & (col < (b + 1) * S))
        attn_bias = jnp.where(in_blk, 0.0, attn_bias)

    # ---- encoder layers (unrolled; activation never leaves vregs/VMEM) ------
    for l in range(N_LAYERS):
        wqkv = wqkvb_ref[l, 0:H, :]                      # (H, 3H); scale folded into Q
        bqkv = wqkvb_ref[l, H:H + 1, :]                  # (1, 3H)
        qkv = jnp.dot(x, wqkv, preferred_element_type=jnp.float32) + bqkv

        wo = wob_ref[l, 0:H, :]                          # (H, H)
        attn = wob_ref[l, H:H + 1, :]                    # start from output bias
        for h in range(NH):
            qh = qkv[:, h * HD:(h + 1) * HD]             # (BS, HD)
            kh = qkv[:, H + h * HD:H + (h + 1) * HD]
            vh = qkv[:, 2 * H + h * HD:2 * H + (h + 1) * HD]
            # q @ k^T via dot_general (trans_b) -> (BS, BS), masked block-diagonal
            s = jax.lax.dot_general(qh, kh, (((1,), (1,)), ((), ())),
                                    preferred_element_type=jnp.float32)
            s = s + attn_bias
            s = s - jnp.max(s, axis=-1, keepdims=True)
            p = jnp.exp(s)
            p = p * pl.reciprocal(jnp.sum(p, axis=-1, keepdims=True), approx=True)
            ctx = jnp.dot(p, vh, preferred_element_type=jnp.float32)     # (BS, HD)
            # Fold the per-head out-projection into the accumulation: no lane
            # concatenate of the NH width-HD context pieces.
            attn = attn + jnp.dot(ctx, wo[h * HD:(h + 1) * HD, :],
                                  preferred_element_type=jnp.float32)

        h1 = _layernorm(x + attn,
                        tab_ref[R_LN + 4 * l + 0:R_LN + 4 * l + 1, :],
                        tab_ref[R_LN + 4 * l + 1:R_LN + 4 * l + 2, :])

        ff = (jnp.dot(h1, w1b_ref[l, 0:H, :], preferred_element_type=jnp.float32)
              + w1b_ref[l, H:H + 1, :])
        # TODO(synk): HF RoBERTa/BART use exact erf GELU; tanh approximation
        # deviates slightly from the PyTorch reference.
        ff = jax.nn.gelu(ff, approximate=True)
        ff = (jnp.dot(ff, w2b_ref[l, 0:FF, :], preferred_element_type=jnp.float32)
              + w2b_ref[l, FF:FF + 1, :])
        x = _layernorm(h1 + ff,
                       tab_ref[R_LN + 4 * l + 2:R_LN + 4 * l + 3, :],
                       tab_ref[R_LN + 4 * l + 3:R_LN + 4 * l + 4, :])

    # ---- pooling + classification head --------------------------------------
    # TODO(synk): facebook/bart-large-mnli pools the final EOS token; token-0
    # (CLS) pooling matches RoBERTa-style heads.
    pooled = jnp.concatenate([x[b * S:b * S + 1, :] for b in range(B)], axis=0)
    hcls = jnp.tanh(jnp.dot(pooled, cls_wdb_ref[0:H, :],
                            preferred_element_type=jnp.float32)
                    + cls_wdb_ref[H:H + 1, :])
    logits = (jnp.dot(hcls, cls_head_ref[0:H, :],
                      preferred_element_type=jnp.float32)
              + cls_head_ref[H:H + 1, :])                # (B, 128); lanes >=3 are 0

    # Fused 2-way entailment softmax over [contradiction(0), entailment(2)]
    # (exact divide for parity with the PyTorch .softmax()).
    lc = logits[:, 0:1]
    le = logits[:, 2:3]
    m = jnp.maximum(lc, le)
    pc = jnp.exp(lc - m)
    pe = jnp.exp(le - m)
    p_ent = pe / (pc + pe)                               # (B, 1)

    lane = jax.lax.broadcasted_iota(jnp.int32, (B, N_PAD), 1)
    out_ref[...] = jnp.where(lane == ENT_COL, p_ent, logits).astype(out_ref.dtype)


# ---------------------------------- parameters --------------------------------

def init_params(key):
    ks = jax.random.split(key, 9)

    def nrm(k, shape, s=0.02):
        return (s * jax.random.normal(k, shape)).astype(jnp.float32)

    scale = 1.0 / float(HD) ** 0.5

    # Packed tables: word emb | pos emb | type emb | emb-LN | per-layer LN vecs
    word_emb = nrm(ks[0], (VOCAB, H))
    pos_emb = nrm(ks[1], (S, H))
    type_emb = nrm(ks[2], (2, H))
    emb_ln = jnp.concatenate([jnp.ones((1, H)), jnp.zeros((1, H))], axis=0)
    ln_rows = []
    for _ in range(N_LAYERS):
        ln_rows += [jnp.ones((1, H)), jnp.zeros((1, H)),
                    jnp.ones((1, H)), jnp.zeros((1, H))]
    tables = jnp.concatenate(
        [word_emb, pos_emb, type_emb, emb_ln] + ln_rows, axis=0).astype(jnp.float32)
    assert tables.shape == (N_TAB_ROWS, H)

    # Encoder weights with biases folded in as an extra trailing row, and the
    # attention scale folded into the Q columns of the fused QKV projection.
    wqkv = nrm(ks[3], (N_LAYERS, H, 3 * H)).at[:, :, :H].multiply(scale)
    wqkvb = jnp.concatenate([wqkv, jnp.zeros((N_LAYERS, 1, 3 * H))], axis=1)
    wob = jnp.concatenate([nrm(ks[4], (N_LAYERS, H, H)),
                           jnp.zeros((N_LAYERS, 1, H))], axis=1)
    w1b = jnp.concatenate([nrm(ks[5], (N_LAYERS, H, FF)),
                           jnp.zeros((N_LAYERS, 1, FF))], axis=1)
    w2b = jnp.concatenate([nrm(ks[6], (N_LAYERS, FF, H)),
                           jnp.zeros((N_LAYERS, 1, H))], axis=1)

    # Classifier head (dense + tanh + out-proj), out-proj zero-padded to 128 lanes.
    cls_wdb = jnp.concatenate([nrm(ks[7], (H, H)), jnp.zeros((1, H))], axis=0)
    cls_wo = jnp.zeros((H, N_PAD)).at[:, :N_LABELS].set(nrm(ks[8], (H, N_LABELS)))
    cls_head = jnp.concatenate([cls_wo, jnp.zeros((1, N_PAD))], axis=0)

    return {"tables": tables,
            "wqkvb": wqkvb.astype(jnp.float32),
            "wob": wob.astype(jnp.float32),
            "w1b": w1b.astype(jnp.float32),
            "w2b": w2b.astype(jnp.float32),
            "cls_wdb": cls_wdb.astype(jnp.float32),
            "cls_head": cls_head.astype(jnp.float32)}


# ------------------------------------ forward ---------------------------------

@jax.jit
def nli_forward(params, token_ids, token_type_ids):
    # TODO(synk): HF string tokenization has no Pallas equivalent; the forward
    # consumes integer token ids + token-type ids directly.
    ids2 = jnp.stack([token_ids.reshape(-1).astype(jnp.int32),
                      token_type_ids.reshape(-1).astype(jnp.int32)], axis=1)  # (BS, 2)

    operands = (ids2, params["tables"], params["wqkvb"], params["wob"],
                params["w1b"], params["w2b"], params["cls_wdb"], params["cls_head"])

    bytes_accessed = int(sum(op.size * op.dtype.itemsize for op in operands)
                         + B * N_PAD * 4)
    vmem = pltpu.MemorySpace.VMEM

    out = pl.pallas_call(
        _nli_fused_kernel,
        out_shape=jax.ShapeDtypeStruct((B, N_PAD), jnp.float32),
        in_specs=[pl.BlockSpec(memory_space=vmem) for _ in operands],
        out_specs=pl.BlockSpec(memory_space=vmem),
        cost_estimate=pl.CostEstimate(flops=int(FLOPS),
                                      transcendentals=int(TRANSCENDENTALS),
                                      bytes_accessed=bytes_accessed),
    )(*operands)

    logits = out[:, :N_LABELS]       # same as PyTorch model(x)[0]
    p_entail = out[:, ENT_COL]       # fused entailment probability per row
    return logits, p_entail


def get_entailment_score(params, token_ids, token_type_ids):
    # Mirrors NLIModelTorch.get_entailment_score: softmax over
    # [contradiction, entailment] logits, prob of entailment for batch row 0.
    _, p_entail = nli_forward(params, token_ids, token_type_ids)
    return p_entail[0]


if __name__ == "__main__":
    key = jax.random.PRNGKey(0)
    pkey, ikey = jax.random.split(key)
    params = init_params(pkey)

    # Deterministic synthetic "tokenization": [premise tokens | hypothesis tokens]
    token_ids = jax.random.randint(ikey, (B, S), 0, VOCAB, dtype=jnp.int32)
    token_type_ids = jnp.concatenate(
        [jnp.zeros((B, S // 2), jnp.int32), jnp.ones((B, S // 2), jnp.int32)], axis=1)

    logits, p_entail = nli_forward(params, token_ids, token_type_ids)
    logits = jax.block_until_ready(logits)
    p_entail = jax.block_until_ready(p_entail)
    score = float(get_entailment_score(params, token_ids, token_type_ids))

    assert logits.shape == (B, N_LABELS)
    assert bool(jnp.all(jnp.isfinite(logits)))
    assert 0.0 <= score <= 1.0
    print("KERNEL_OK")
</pallas_src>

<mosaic_0001>
module attributes {stable_mosaic.version = 11 : i64} {
  func.func @_nli_fused_kernel(%arg0: memref<16x2xi32, #tpu.memory_space<vmem>>, %arg1: memref<84x32xf32, #tpu.memory_space<vmem>>, %arg2: memref<2x33x96xf32, #tpu.memory_space<vmem>>, %arg3: memref<2x33x32xf32, #tpu.memory_space<vmem>>, %arg4: memref<2x33x64xf32, #tpu.memory_space<vmem>>, %arg5: memref<2x65x32xf32, #tpu.memory_space<vmem>>, %arg6: memref<33x32xf32, #tpu.memory_space<vmem>>, %arg7: memref<33x128xf32, #tpu.memory_space<vmem>>, %arg8: memref<2x128xf32, #tpu.memory_space<vmem>>) attributes {dimension_semantics = [], scalar_prefetch = 0 : i64, scratch_operands = 0 : i64, tpu.core_type = #tpu.core_type<tc>} {
    %c0 = arith.constant 0 : index
    %c0_0 = arith.constant 0 : index
    %0 = vector.load %arg0[%c0, %c0_0] : memref<16x2xi32, #tpu.memory_space<vmem>>, vector<16x2xi32>
    %1 = vector.extract_strided_slice %0 {offsets = [0, 0], sizes = [16, 1], strides = [1, 1]} : vector<16x2xi32> to vector<16x1xi32>
    %2 = vector.extract_strided_slice %0 {offsets = [0, 1], sizes = [16, 1], strides = [1, 1]} : vector<16x2xi32> to vector<16x1xi32>
    %3 = arith.sitofp %2 : vector<16x1xi32> to vector<16x1xf32>
    %4 = tpu.iota {dimensions = array<i32: 1>} : vector<16x64xi32>
    %5 = vector.broadcast %1 : vector<16x1xi32> to vector<16x64xi32>
    %6 = arith.cmpi eq, %5, %4 : vector<16x64xi32>
    %7 = arith.extui %6 : vector<16x64xi1> to vector<16x64xi32>
    %8 = arith.sitofp %7 : vector<16x64xi32> to vector<16x64xf32>
    %c0_1 = arith.constant 0 : index
    %c0_2 = arith.constant 0 : index
    %9 = vector.load %arg1[%c0_1, %c0_2] : memref<84x32xf32, #tpu.memory_space<vmem>>, vector<64x32xf32>
    %cst = arith.constant dense<0.000000e+00> : vector<16x32xf32>
    %10 = tpu.matmul %8, %9, %cst {dimension_numbers = #tpu.dot_dimension_numbers<[1], [0], [0], [1], [0, 0, 1, 1], [], []>} : vector<16x64xf32>, vector<64x32xf32>, vector<16x32xf32> -> vector<16x32xf32>
    %c64 = arith.constant 64 : index
    %c0_3 = arith.constant 0 : index
    %11 = vector.load %arg1[%c64, %c0_3] : memref<84x32xf32, #tpu.memory_space<vmem>>, vector<8x32xf32>
    %12 = tpu.concatenate %11, %11 in 0 : vector<8x32xf32>, vector<8x32xf32> -> vector<16x32xf32>
    %c72 = arith.constant 72 : index
    %c0_4 = arith.constant 0 : index
    %13 = vector.load %arg1[%c72, %c0_4] : memref<84x32xf32, #tpu.memory_space<vmem>>, vector<1x32xf32>
    %c73 = arith.constant 73 : index
    %c0_5 = arith.constant 0 : index
    %14 = vector.load %arg1[%c73, %c0_5] : memref<84x32xf32, #tpu.memory_space<vmem>>, vector<1x32xf32>
    %cst_6 = arith.constant 1.000000e+00 : f32
    %15 = vector.broadcast %cst_6 : f32 to vector<16x1xf32>
    %16 = arith.subf %15, %3 : vector<16x1xf32>
    %17 = vector.broadcast %13 : vector<1x32xf32> to vector<16x32xf32>
    %18 = vector.broadcast %16 : vector<16x1xf32> to vector<16x32xf32>
    %19 = arith.mulf %17, %18 : vector<16x32xf32>
    %20 = vector.broadcast %14 : vector<1x32xf32> to vector<16x32xf32>
    %21 = vector.broadcast %3 : vector<16x1xf32> to vector<16x32xf32>
    %22 = arith.mulf %20, %21 : vector<16x32xf32>
    %23 = arith.addf %19, %22 : vector<16x32xf32>
    %24 = arith.addf %10, %12 : vector<16x32xf32>
    %25 = arith.addf %24, %23 : vector<16x32xf32>
    %c74 = arith.constant 74 : index
    %c0_7 = arith.constant 0 : index
    %26 = vector.load %arg1[%c74, %c0_7] : memref<84x32xf32, #tpu.memory_space<vmem>>, vector<1x32xf32>
    %c75 = arith.constant 75 : index
    %c0_8 = arith.constant 0 : index
    %27 = vector.load %arg1[%c75, %c0_8] : memref<84x32xf32, #tpu.memory_space<vmem>>, vector<1x32xf32>
    %cst_9 = arith.constant dense<0.000000e+00> : vector<16xf32>
    %28 = vector.multi_reduction <add>, %25, %cst_9 [1] : vector<16x32xf32> to vector<16xf32>
    %29 = vector.shape_cast %28 : vector<16xf32> to vector<16x1xf32>
    %cst_10 = arith.constant 3.200000e+01 : f32
    %30 = vector.broadcast %cst_10 : f32 to vector<16x1xf32>
    %31 = arith.divf %29, %30 : vector<16x1xf32>
    %32 = vector.broadcast %31 : vector<16x1xf32> to vector<16x32xf32>
    %33 = arith.subf %25, %32 : vector<16x32xf32>
    %34 = arith.mulf %33, %33 : vector<16x32xf32>
    %cst_11 = arith.constant dense<0.000000e+00> : vector<16xf32>
    %35 = vector.multi_reduction <add>, %34, %cst_11 [1] : vector<16x32xf32> to vector<16xf32>
    %36 = vector.shape_cast %35 : vector<16xf32> to vector<16x1xf32>
    %cst_12 = arith.constant 3.200000e+01 : f32
    %37 = vector.broadcast %cst_12 : f32 to vector<16x1xf32>
    %38 = arith.divf %36, %37 : vector<16x1xf32>
    %39 = vector.broadcast %31 : vector<16x1xf32> to vector<16x32xf32>
    %40 = arith.subf %25, %39 : vector<16x32xf32>
    %cst_13 = arith.constant 9.99999974E-6 : f32
    %41 = vector.broadcast %cst_13 : f32 to vector<16x1xf32>
    %42 = arith.addf %38, %41 : vector<16x1xf32>
    %43 = math.rsqrt %42 : vector<16x1xf32>
    %44 = vector.broadcast %43 : vector<16x1xf32> to vector<16x32xf32>
    %45 = arith.mulf %40, %44 : vector<16x32xf32>
    %46 = vector.broadcast %26 : vector<1x32xf32> to vector<16x32xf32>
    %47 = arith.mulf %45, %46 : vector<16x32xf32>
    %48 = vector.broadcast %27 : vector<1x32xf32> to vector<16x32xf32>
    %49 = arith.addf %47, %48 : vector<16x32xf32>
    %50 = tpu.iota {dimensions = array<i32: 0>} : vector<16x16xi32>
    %51 = tpu.iota {dimensions = array<i32: 1>} : vector<16x16xi32>
    %cst_14 = arith.constant -1.000000e+30 : f32
    %52 = vector.broadcast %cst_14 : f32 to vector<16x16xf32>
    %c0_i32 = arith.constant 0 : i32
    %53 = vector.broadcast %c0_i32 : i32 to vector<16x16xi32>
    %54 = arith.cmpi sge, %50, %53 : vector<16x16xi32>
    %c8_i32 = arith.constant 8 : i32
    %55 = vector.broadcast %c8_i32 : i32 to vector<16x16xi32>
    %56 = arith.cmpi slt, %50, %55 : vector<16x16xi32>
    %57 = arith.andi %54, %56 : vector<16x16xi1>
    %c0_i32_15 = arith.constant 0 : i32
    %58 = vector.broadcast %c0_i32_15 : i32 to vector<16x16xi32>
    %59 = arith.cmpi sge, %51, %58 : vector<16x16xi32>
    %60 = arith.andi %57, %59 : vector<16x16xi1>
    %c8_i32_16 = arith.constant 8 : i32
    %61 = vector.broadcast %c8_i32_16 : i32 to vector<16x16xi32>
    %62 = arith.cmpi slt, %51, %61 : vector<16x16xi32>
    %63 = arith.andi %60, %62 : vector<16x16xi1>
    %cst_17 = arith.constant 0.000000e+00 : f32
    %64 = vector.broadcast %cst_17 : f32 to vector<16x16xf32>
    %65 = arith.select %63, %64, %52 : vector<16x16xi1>, vector<16x16xf32>
    %c8_i32_18 = arith.constant 8 : i32
    %66 = vector.broadcast %c8_i32_18 : i32 to vector<16x16xi32>
    %67 = arith.cmpi sge, %50, %66 : vector<16x16xi32>
    %c16_i32 = arith.constant 16 : i32
    %68 = vector.broadcast %c16_i32 : i32 to vector<16x16xi32>
    %69 = arith.cmpi slt, %50, %68 : vector<16x16xi32>
    %70 = arith.andi %67, %69 : vector<16x16xi1>
    %c8_i32_19 = arith.constant 8 : i32
    %71 = vector.broadcast %c8_i32_19 : i32 to vector<16x16xi32>
    %72 = arith.cmpi sge, %51, %71 : vector<16x16xi32>
    %73 = arith.andi %70, %72 : vector<16x16xi1>
    %c16_i32_20 = arith.constant 16 : i32
    %74 = vector.broadcast %c16_i32_20 : i32 to vector<16x16xi32>
    %75 = arith.cmpi slt, %51, %74 : vector<16x16xi32>
    %76 = arith.andi %73, %75 : vector<16x16xi1>
    %cst_21 = arith.constant 0.000000e+00 : f32
    %77 = vector.broadcast %cst_21 : f32 to vector<16x16xf32>
    %78 = arith.select %76, %77, %65 : vector<16x16xi1>, vector<16x16xf32>
    %c0_22 = arith.constant 0 : index
    %c0_23 = arith.constant 0 : index
    %c0_24 = arith.constant 0 : index
    %79 = vector.load %arg2[%c0_22, %c0_23, %c0_24] : memref<2x33x96xf32, #tpu.memory_space<vmem>>, vector<1x32x96xf32>
    %80 = vector.shape_cast %79 : vector<1x32x96xf32> to vector<32x96xf32>
    %c0_25 = arith.constant 0 : index
    %c32 = arith.constant 32 : index
    %c0_26 = arith.constant 0 : index
    %81 = vector.load %arg2[%c0_25, %c32, %c0_26] : memref<2x33x96xf32, #tpu.memory_space<vmem>>, vector<1x1x96xf32>
    %82 = vector.shape_cast %81 : vector<1x1x96xf32> to vector<1x96xf32>
    %cst_27 = arith.constant dense<0.000000e+00> : vector<16x96xf32>
    %83 = tpu.matmul %49, %80, %cst_27 {dimension_numbers = #tpu.dot_dimension_numbers<[1], [0], [0], [1], [0, 0, 1, 1], [], []>} : vector<16x32xf32>, vector<32x96xf32>, vector<16x96xf32> -> vector<16x96xf32>
    %84 = vector.broadcast %82 : vector<1x96xf32> to vector<16x96xf32>
    %85 = arith.addf %83, %84 : vector<16x96xf32>
    %c0_28 = arith.constant 0 : index
    %c0_29 = arith.constant 0 : index
    %c0_30 = arith.constant 0 : index
    %86 = vector.load %arg3[%c0_28, %c0_29, %c0_30] : memref<2x33x32xf32, #tpu.memory_space<vmem>>, vector<1x32x32xf32>
    %87 = vector.shape_cast %86 : vector<1x32x32xf32> to vector<32x32xf32>
    %c0_31 = arith.constant 0 : index
    %c32_32 = arith.constant 32 : index
    %c0_33 = arith.constant 0 : index
    %88 = vector.load %arg3[%c0_31, %c32_32, %c0_33] : memref<2x33x32xf32, #tpu.memory_space<vmem>>, vector<1x1x32xf32>
    %89 = vector.shape_cast %88 : vector<1x1x32xf32> to vector<1x32xf32>
    %90 = vector.extract_strided_slice %85 {offsets = [0, 0], sizes = [16, 8], strides = [1, 1]} : vector<16x96xf32> to vector<16x8xf32>
    %91 = vector.extract_strided_slice %85 {offsets = [0, 32], sizes = [16, 8], strides = [1, 1]} : vector<16x96xf32> to vector<16x8xf32>
    %92 = vector.extract_strided_slice %85 {offsets = [0, 64], sizes = [16, 8], strides = [1, 1]} : vector<16x96xf32> to vector<16x8xf32>
    %cst_34 = arith.constant dense<0.000000e+00> : vector<16x16xf32>
    %93 = tpu.matmul %90, %91, %cst_34 {dimension_numbers = #tpu.dot_dimension_numbers<[1], [1], [0], [0], [0, 0, 1, 0], [], []>} : vector<16x8xf32>, vector<16x8xf32>, vector<16x16xf32> -> vector<16x16xf32>
    %94 = arith.addf %93, %78 : vector<16x16xf32>
    %cst_35 = arith.constant dense<0xFF800000> : vector<16xf32>
    %95 = vector.multi_reduction <maximumf>, %94, %cst_35 [1] : vector<16x16xf32> to vector<16xf32>
    %96 = vector.shape_cast %95 : vector<16xf32> to vector<16x1xf32>
    %97 = vector.broadcast %96 : vector<16x1xf32> to vector<16x16xf32>
    %98 = arith.subf %94, %97 : vector<16x16xf32>
    %99 = math.exp %98 : vector<16x16xf32>
    %cst_36 = arith.constant dense<0.000000e+00> : vector<16xf32>
    %100 = vector.multi_reduction <add>, %99, %cst_36 [1] : vector<16x16xf32> to vector<16xf32>
    %101 = vector.shape_cast %100 : vector<16xf32> to vector<16x1xf32>
    %102 = tpu.reciprocal %101 {approx = true} : vector<16x1xf32> -> vector<16x1xf32>
    %103 = vector.broadcast %102 : vector<16x1xf32> to vector<16x16xf32>
    %104 = arith.mulf %99, %103 : vector<16x16xf32>
    %cst_37 = arith.constant dense<0.000000e+00> : vector<16x8xf32>
    %105 = tpu.matmul %104, %92, %cst_37 {dimension_numbers = #tpu.dot_dimension_numbers<[1], [0], [0], [1], [0, 0, 1, 1], [], []>} : vector<16x16xf32>, vector<16x8xf32>, vector<16x8xf32> -> vector<16x8xf32>
    %106 = vector.extract_strided_slice %87 {offsets = [0, 0], sizes = [8, 32], strides = [1, 1]} : vector<32x32xf32> to vector<8x32xf32>
    %cst_38 = arith.constant dense<0.000000e+00> : vector<16x32xf32>
    %107 = tpu.matmul %105, %106, %cst_38 {dimension_numbers = #tpu.dot_dimension_numbers<[1], [0], [0], [1], [0, 0, 1, 1], [], []>} : vector<16x8xf32>, vector<8x32xf32>, vector<16x32xf32> -> vector<16x32xf32>
    %108 = vector.broadcast %89 : vector<1x32xf32> to vector<16x32xf32>
    %109 = arith.addf %108, %107 : vector<16x32xf32>
    %110 = vector.extract_strided_slice %85 {offsets = [0, 8], sizes = [16, 8], strides = [1, 1]} : vector<16x96xf32> to vector<16x8xf32>
    %111 = vector.extract_strided_slice %85 {offsets = [0, 40], sizes = [16, 8], strides = [1, 1]} : vector<16x96xf32> to vector<16x8xf32>
    %112 = vector.extract_strided_slice %85 {offsets = [0, 72], sizes = [16, 8], strides = [1, 1]} : vector<16x96xf32> to vector<16x8xf32>
    %cst_39 = arith.constant dense<0.000000e+00> : vector<16x16xf32>
    %113 = tpu.matmul %110, %111, %cst_39 {dimension_numbers = #tpu.dot_dimension_numbers<[1], [1], [0], [0], [0, 0, 1, 0], [], []>} : vector<16x8xf32>, vector<16x8xf32>, vector<16x16xf32> -> vector<16x16xf32>
    %114 = arith.addf %113, %78 : vector<16x16xf32>
    %cst_40 = arith.constant dense<0xFF800000> : vector<16xf32>
    %115 = vector.multi_reduction <maximumf>, %114, %cst_40 [1] : vector<16x16xf32> to vector<16xf32>
    %116 = vector.shape_cast %115 : vector<16xf32> to vector<16x1xf32>
    %117 = vector.broadcast %116 : vector<16x1xf32> to vector<16x16xf32>
    %118 = arith.subf %114, %117 : vector<16x16xf32>
    %119 = math.exp %118 : vector<16x16xf32>
    %cst_41 = arith.constant dense<0.000000e+00> : vector<16xf32>
    %120 = vector.multi_reduction <add>, %119, %cst_41 [1] : vector<16x16xf32> to vector<16xf32>
    %121 = vector.shape_cast %120 : vector<16xf32> to vector<16x1xf32>
    %122 = tpu.reciprocal %121 {approx = true} : vector<16x1xf32> -> vector<16x1xf32>
    %123 = vector.broadcast %122 : vector<16x1xf32> to vector<16x16xf32>
    %124 = arith.mulf %119, %123 : vector<16x16xf32>
    %cst_42 = arith.constant dense<0.000000e+00> : vector<16x8xf32>
    %125 = tpu.matmul %124, %112, %cst_42 {dimension_numbers = #tpu.dot_dimension_numbers<[1], [0], [0], [1], [0, 0, 1, 1], [], []>} : vector<16x16xf32>, vector<16x8xf32>, vector<16x8xf32> -> vector<16x8xf32>
    %126 = vector.extract_strided_slice %87 {offsets = [8, 0], sizes = [8, 32], strides = [1, 1]} : vector<32x32xf32> to vector<8x32xf32>
    %cst_43 = arith.constant dense<0.000000e+00> : vector<16x32xf32>
    %127 = tpu.matmul %125, %126, %cst_43 {dimension_numbers = #tpu.dot_dimension_numbers<[1], [0], [0], [1], [0, 0, 1, 1], [], []>} : vector<16x8xf32>, vector<8x32xf32>, vector<16x32xf32> -> vector<16x32xf32>
    %128 = arith.addf %109, %127 : vector<16x32xf32>
    %129 = vector.extract_strided_slice %85 {offsets = [0, 16], sizes = [16, 8], strides = [1, 1]} : vector<16x96xf32> to vector<16x8xf32>
    %130 = vector.extract_strided_slice %85 {offsets = [0, 48], sizes = [16, 8], strides = [1, 1]} : vector<16x96xf32> to vector<16x8xf32>
    %131 = vector.extract_strided_slice %85 {offsets = [0, 80], sizes = [16, 8], strides = [1, 1]} : vector<16x96xf32> to vector<16x8xf32>
    %cst_44 = arith.constant dense<0.000000e+00> : vector<16x16xf32>
    %132 = tpu.matmul %129, %130, %cst_44 {dimension_numbers = #tpu.dot_dimension_numbers<[1], [1], [0], [0], [0, 0, 1, 0], [], []>} : vector<16x8xf32>, vector<16x8xf32>, vector<16x16xf32> -> vector<16x16xf32>
    %133 = arith.addf %132, %78 : vector<16x16xf32>
    %cst_45 = arith.constant dense<0xFF800000> : vector<16xf32>
    %134 = vector.multi_reduction <maximumf>, %133, %cst_45 [1] : vector<16x16xf32> to vector<16xf32>
    %135 = vector.shape_cast %134 : vector<16xf32> to vector<16x1xf32>
    %136 = vector.broadcast %135 : vector<16x1xf32> to vector<16x16xf32>
    %137 = arith.subf %133, %136 : vector<16x16xf32>
    %138 = math.exp %137 : vector<16x16xf32>
    %cst_46 = arith.constant dense<0.000000e+00> : vector<16xf32>
    %139 = vector.multi_reduction <add>, %138, %cst_46 [1] : vector<16x16xf32> to vector<16xf32>
    %140 = vector.shape_cast %139 : vector<16xf32> to vector<16x1xf32>
    %141 = tpu.reciprocal %140 {approx = true} : vector<16x1xf32> -> vector<16x1xf32>
    %142 = vector.broadcast %141 : vector<16x1xf32> to vector<16x16xf32>
    %143 = arith.mulf %138, %142 : vector<16x16xf32>
    %cst_47 = arith.constant dense<0.000000e+00> : vector<16x8xf32>
    %144 = tpu.matmul %143, %131, %cst_47 {dimension_numbers = #tpu.dot_dimension_numbers<[1], [0], [0], [1], [0, 0, 1, 1], [], []>} : vector<16x16xf32>, vector<16x8xf32>, vector<16x8xf32> -> vector<16x8xf32>
    %145 = vector.extract_strided_slice %87 {offsets = [16, 0], sizes = [8, 32], strides = [1, 1]} : vector<32x32xf32> to vector<8x32xf32>
    %cst_48 = arith.constant dense<0.000000e+00> : vector<16x32xf32>
    %146 = tpu.matmul %144, %145, %cst_48 {dimension_numbers = #tpu.dot_dimension_numbers<[1], [0], [0], [1], [0, 0, 1, 1], [], []>} : vector<16x8xf32>, vector<8x32xf32>, vector<16x32xf32> -> vector<16x32xf32>
    %147 = arith.addf %128, %146 : vector<16x32xf32>
    %148 = vector.extract_strided_slice %85 {offsets = [0, 24], sizes = [16, 8], strides = [1, 1]} : vector<16x96xf32> to vector<16x8xf32>
    %149 = vector.extract_strided_slice %85 {offsets = [0, 56], sizes = [16, 8], strides = [1, 1]} : vector<16x96xf32> to vector<16x8xf32>
    %150 = vector.extract_strided_slice %85 {offsets = [0, 88], sizes = [16, 8], strides = [1, 1]} : vector<16x96xf32> to vector<16x8xf32>
    %cst_49 = arith.constant dense<0.000000e+00> : vector<16x16xf32>
    %151 = tpu.matmul %148, %149, %cst_49 {dimension_numbers = #tpu.dot_dimension_numbers<[1], [1], [0], [0], [0, 0, 1, 0], [], []>} : vector<16x8xf32>, vector<16x8xf32>, vector<16x16xf32> -> vector<16x16xf32>
    %152 = arith.addf %151, %78 : vector<16x16xf32>
    %cst_50 = arith.constant dense<0xFF800000> : vector<16xf32>
    %153 = vector.multi_reduction <maximumf>, %152, %cst_50 [1] : vector<16x16xf32> to vector<16xf32>
    %154 = vector.shape_cast %153 : vector<16xf32> to vector<16x1xf32>
    %155 = vector.broadcast %154 : vector<16x1xf32> to vector<16x16xf32>
    %156 = arith.subf %152, %155 : vector<16x16xf32>
    %157 = math.exp %156 : vector<16x16xf32>
    %cst_51 = arith.constant dense<0.000000e+00> : vector<16xf32>
    %158 = vector.multi_reduction <add>, %157, %cst_51 [1] : vector<16x16xf32> to vector<16xf32>
    %159 = vector.shape_cast %158 : vector<16xf32> to vector<16x1xf32>
    %160 = tpu.reciprocal %159 {approx = true} : vector<16x1xf32> -> vector<16x1xf32>
    %161 = vector.broadcast %160 : vector<16x1xf32> to vector<16x16xf32>
    %162 = arith.mulf %157, %161 : vector<16x16xf32>
    %cst_52 = arith.constant dense<0.000000e+00> : vector<16x8xf32>
    %163 = tpu.matmul %162, %150, %cst_52 {dimension_numbers = #tpu.dot_dimension_numbers<[1], [0], [0], [1], [0, 0, 1, 1], [], []>} : vector<16x16xf32>, vector<16x8xf32>, vector<16x8xf32> -> vector<16x8xf32>
    %164 = vector.extract_strided_slice %87 {offsets = [24, 0], sizes = [8, 32], strides = [1, 1]} : vector<32x32xf32> to vector<8x32xf32>
    %cst_53 = arith.constant dense<0.000000e+00> : vector<16x32xf32>
    %165 = tpu.matmul %163, %164, %cst_53 {dimension_numbers = #tpu.dot_dimension_numbers<[1], [0], [0], [1], [0, 0, 1, 1], [], []>} : vector<16x8xf32>, vector<8x32xf32>, vector<16x32xf32> -> vector<16x32xf32>
    %166 = arith.addf %147, %165 : vector<16x32xf32>
    %167 = arith.addf %49, %166 : vector<16x32xf32>
    %c76 = arith.constant 76 : index
    %c0_54 = arith.constant 0 : index
    %168 = vector.load %arg1[%c76, %c0_54] : memref<84x32xf32, #tpu.memory_space<vmem>>, vector<1x32xf32>
    %c77 = arith.constant 77 : index
    %c0_55 = arith.constant 0 : index
    %169 = vector.load %arg1[%c77, %c0_55] : memref<84x32xf32, #tpu.memory_space<vmem>>, vector<1x32xf32>
    %cst_56 = arith.constant dense<0.000000e+00> : vector<16xf32>
    %170 = vector.multi_reduction <add>, %167, %cst_56 [1] : vector<16x32xf32> to vector<16xf32>
    %171 = vector.shape_cast %170 : vector<16xf32> to vector<16x1xf32>
    %cst_57 = arith.constant 3.200000e+01 : f32
    %172 = vector.broadcast %cst_57 : f32 to vector<16x1xf32>
    %173 = arith.divf %171, %172 : vector<16x1xf32>
    %174 = vector.broadcast %173 : vector<16x1xf32> to vector<16x32xf32>
    %175 = arith.subf %167, %174 : vector<16x32xf32>
    %176 = arith.mulf %175, %175 : vector<16x32xf32>
    %cst_58 = arith.constant dense<0.000000e+00> : vector<16xf32>
    %177 = vector.multi_reduction <add>, %176, %cst_58 [1] : vector<16x32xf32> to vector<16xf32>
    %178 = vector.shape_cast %177 : vector<16xf32> to vector<16x1xf32>
    %cst_59 = arith.constant 3.200000e+01 : f32
    %179 = vector.broadcast %cst_59 : f32 to vector<16x1xf32>
    %180 = arith.divf %178, %179 : vector<16x1xf32>
    %181 = vector.broadcast %173 : vector<16x1xf32> to vector<16x32xf32>
    %182 = arith.subf %167, %181 : vector<16x32xf32>
    %cst_60 = arith.constant 9.99999974E-6 : f32
    %183 = vector.broadcast %cst_60 : f32 to vector<16x1xf32>
    %184 = arith.addf %180, %183 : vector<16x1xf32>
    %185 = math.rsqrt %184 : vector<16x1xf32>
    %186 = vector.broadcast %185 : vector<16x1xf32> to vector<16x32xf32>
    %187 = arith.mulf %182, %186 : vector<16x32xf32>
    %188 = vector.broadcast %168 : vector<1x32xf32> to vector<16x32xf32>
    %189 = arith.mulf %187, %188 : vector<16x32xf32>
    %190 = vector.broadcast %169 : vector<1x32xf32> to vector<16x32xf32>
    %191 = arith.addf %189, %190 : vector<16x32xf32>
    %c0_61 = arith.constant 0 : index
    %c0_62 = arith.constant 0 : index
    %c0_63 = arith.constant 0 : index
    %192 = vector.load %arg4[%c0_61, %c0_62, %c0_63] : memref<2x33x64xf32, #tpu.memory_space<vmem>>, vector<1x32x64xf32>
    %193 = vector.shape_cast %192 : vector<1x32x64xf32> to vector<32x64xf32>
    %cst_64 = arith.constant dense<0.000000e+00> : vector<16x64xf32>
    %194 = tpu.matmul %191, %193, %cst_64 {dimension_numbers = #tpu.dot_dimension_numbers<[1], [0], [0], [1], [0, 0, 1, 1], [], []>} : vector<16x32xf32>, vector<32x64xf32>, vector<16x64xf32> -> vector<16x64xf32>
    %c0_65 = arith.constant 0 : index
    %c32_66 = arith.constant 32 : index
    %c0_67 = arith.constant 0 : index
    %195 = vector.load %arg4[%c0_65, %c32_66, %c0_67] : memref<2x33x64xf32, #tpu.memory_space<vmem>>, vector<1x1x64xf32>
    %196 = vector.shape_cast %195 : vector<1x1x64xf32> to vector<1x64xf32>
    %197 = vector.broadcast %196 : vector<1x64xf32> to vector<16x64xf32>
    %198 = arith.addf %194, %197 : vector<16x64xf32>
    %199 = arith.mulf %198, %198 : vector<16x64xf32>
    %200 = arith.mulf %198, %199 : vector<16x64xf32>
    %cst_68 = arith.constant 4.471500e-02 : f32
    %201 = vector.broadcast %cst_68 : f32 to vector<16x64xf32>
    %202 = arith.mulf %201, %200 : vector<16x64xf32>
    %203 = arith.addf %198, %202 : vector<16x64xf32>
    %cst_69 = arith.constant 0.797884583 : f32
    %204 = vector.broadcast %cst_69 : f32 to vector<16x64xf32>
    %205 = arith.mulf %204, %203 : vector<16x64xf32>
    %206 = math.tanh %205 : vector<16x64xf32>
    %cst_70 = arith.constant 1.000000e+00 : f32
    %207 = vector.broadcast %cst_70 : f32 to vector<16x64xf32>
    %208 = arith.addf %207, %206 : vector<16x64xf32>
    %cst_71 = arith.constant 5.000000e-01 : f32
    %209 = vector.broadcast %cst_71 : f32 to vector<16x64xf32>
    %210 = arith.mulf %209, %208 : vector<16x64xf32>
    %211 = arith.mulf %198, %210 : vector<16x64xf32>
    %c0_72 = arith.constant 0 : index
    %c0_73 = arith.constant 0 : index
    %c0_74 = arith.constant 0 : index
    %212 = vector.load %arg5[%c0_72, %c0_73, %c0_74] : memref<2x65x32xf32, #tpu.memory_space<vmem>>, vector<1x64x32xf32>
    %213 = vector.shape_cast %212 : vector<1x64x32xf32> to vector<64x32xf32>
    %cst_75 = arith.constant dense<0.000000e+00> : vector<16x32xf32>
    %214 = tpu.matmul %211, %213, %cst_75 {dimension_numbers = #tpu.dot_dimension_numbers<[1], [0], [0], [1], [0, 0, 1, 1], [], []>} : vector<16x64xf32>, vector<64x32xf32>, vector<16x32xf32> -> vector<16x32xf32>
    %c0_76 = arith.constant 0 : index
    %c64_77 = arith.constant 64 : index
    %c0_78 = arith.constant 0 : index
    %215 = vector.load %arg5[%c0_76, %c64_77, %c0_78] : memref<2x65x32xf32, #tpu.memory_space<vmem>>, vector<1x1x32xf32>
    %216 = vector.shape_cast %215 : vector<1x1x32xf32> to vector<1x32xf32>
    %217 = vector.broadcast %216 : vector<1x32xf32> to vector<16x32xf32>
    %218 = arith.addf %214, %217 : vector<16x32xf32>
    %219 = arith.addf %191, %218 : vector<16x32xf32>
    %c78 = arith.constant 78 : index
    %c0_79 = arith.constant 0 : index
    %220 = vector.load %arg1[%c78, %c0_79] : memref<84x32xf32, #tpu.memory_space<vmem>>, vector<1x32xf32>
    %c79 = arith.constant 79 : index
    %c0_80 = arith.constant 0 : index
    %221 = vector.load %arg1[%c79, %c0_80] : memref<84x32xf32, #tpu.memory_space<vmem>>, vector<1x32xf32>
    %cst_81 = arith.constant dense<0.000000e+00> : vector<16xf32>
    %222 = vector.multi_reduction <add>, %219, %cst_81 [1] : vector<16x32xf32> to vector<16xf32>
    %223 = vector.shape_cast %222 : vector<16xf32> to vector<16x1xf32>
    %cst_82 = arith.constant 3.200000e+01 : f32
    %224 = vector.broadcast %cst_82 : f32 to vector<16x1xf32>
    %225 = arith.divf %223, %224 : vector<16x1xf32>
    %226 = vector.broadcast %225 : vector<16x1xf32> to vector<16x32xf32>
    %227 = arith.subf %219, %226 : vector<16x32xf32>
    %228 = arith.mulf %227, %227 : vector<16x32xf32>
    %cst_83 = arith.constant dense<0.000000e+00> : vector<16xf32>
    %229 = vector.multi_reduction <add>, %228, %cst_83 [1] : vector<16x32xf32> to vector<16xf32>
    %230 = vector.shape_cast %229 : vector<16xf32> to vector<16x1xf32>
    %cst_84 = arith.constant 3.200000e+01 : f32
    %231 = vector.broadcast %cst_84 : f32 to vector<16x1xf32>
    %232 = arith.divf %230, %231 : vector<16x1xf32>
    %233 = vector.broadcast %225 : vector<16x1xf32> to vector<16x32xf32>
    %234 = arith.subf %219, %233 : vector<16x32xf32>
    %cst_85 = arith.constant 9.99999974E-6 : f32
    %235 = vector.broadcast %cst_85 : f32 to vector<16x1xf32>
    %236 = arith.addf %232, %235 : vector<16x1xf32>
    %237 = math.rsqrt %236 : vector<16x1xf32>
    %238 = vector.broadcast %237 : vector<16x1xf32> to vector<16x32xf32>
    %239 = arith.mulf %234, %238 : vector<16x32xf32>
    %240 = vector.broadcast %220 : vector<1x32xf32> to vector<16x32xf32>
    %241 = arith.mulf %239, %240 : vector<16x32xf32>
    %242 = vector.broadcast %221 : vector<1x32xf32> to vector<16x32xf32>
    %243 = arith.addf %241, %242 : vector<16x32xf32>
    %c1 = arith.constant 1 : index
    %c0_86 = arith.constant 0 : index
    %c0_87 = arith.constant 0 : index
    %244 = vector.load %arg2[%c1, %c0_86, %c0_87] : memref<2x33x96xf32, #tpu.memory_space<vmem>>, vector<1x32x96xf32>
    %245 = vector.shape_cast %244 : vector<1x32x96xf32> to vector<32x96xf32>
    %c1_88 = arith.constant 1 : index
    %c32_89 = arith.constant 32 : index
    %c0_90 = arith.constant 0 : index
    %246 = vector.load %arg2[%c1_88, %c32_89, %c0_90] : memref<2x33x96xf32, #tpu.memory_space<vmem>>, vector<1x1x96xf32>
    %247 = vector.shape_cast %246 : vector<1x1x96xf32> to vector<1x96xf32>
    %cst_91 = arith.constant dense<0.000000e+00> : vector<16x96xf32>
    %248 = tpu.matmul %243, %245, %cst_91 {dimension_numbers = #tpu.dot_dimension_numbers<[1], [0], [0], [1], [0, 0, 1, 1], [], []>} : vector<16x32xf32>, vector<32x96xf32>, vector<16x96xf32> -> vector<16x96xf32>
    %249 = vector.broadcast %247 : vector<1x96xf32> to vector<16x96xf32>
    %250 = arith.addf %248, %249 : vector<16x96xf32>
    %c1_92 = arith.constant 1 : index
    %c0_93 = arith.constant 0 : index
    %c0_94 = arith.constant 0 : index
    %251 = vector.load %arg3[%c1_92, %c0_93, %c0_94] : memref<2x33x32xf32, #tpu.memory_space<vmem>>, vector<1x32x32xf32>
    %252 = vector.shape_cast %251 : vector<1x32x32xf32> to vector<32x32xf32>
    %c1_95 = arith.constant 1 : index
    %c32_96 = arith.constant 32 : index
    %c0_97 = arith.constant 0 : index
    %253 = vector.load %arg3[%c1_95, %c32_96, %c0_97] : memref<2x33x32xf32, #tpu.memory_space<vmem>>, vector<1x1x32xf32>
    %254 = vector.shape_cast %253 : vector<1x1x32xf32> to vector<1x32xf32>
    %255 = vector.extract_strided_slice %250 {offsets = [0, 0], sizes = [16, 8], strides = [1, 1]} : vector<16x96xf32> to vector<16x8xf32>
    %256 = vector.extract_strided_slice %250 {offsets = [0, 32], sizes = [16, 8], strides = [1, 1]} : vector<16x96xf32> to vector<16x8xf32>
    %257 = vector.extract_strided_slice %250 {offsets = [0, 64], sizes = [16, 8], strides = [1, 1]} : vector<16x96xf32> to vector<16x8xf32>
    %cst_98 = arith.constant dense<0.000000e+00> : vector<16x16xf32>
    %258 = tpu.matmul %255, %256, %cst_98 {dimension_numbers = #tpu.dot_dimension_numbers<[1], [1], [0], [0], [0, 0, 1, 0], [], []>} : vector<16x8xf32>, vector<16x8xf32>, vector<16x16xf32> -> vector<16x16xf32>
    %259 = arith.addf %258, %78 : vector<16x16xf32>
    %cst_99 = arith.constant dense<0xFF800000> : vector<16xf32>
    %260 = vector.multi_reduction <maximumf>, %259, %cst_99 [1] : vector<16x16xf32> to vector<16xf32>
    %261 = vector.shape_cast %260 : vector<16xf32> to vector<16x1xf32>
    %262 = vector.broadcast %261 : vector<16x1xf32> to vector<16x16xf32>
    %263 = arith.subf %259, %262 : vector<16x16xf32>
    %264 = math.exp %263 : vector<16x16xf32>
    %cst_100 = arith.constant dense<0.000000e+00> : vector<16xf32>
    %265 = vector.multi_reduction <add>, %264, %cst_100 [1] : vector<16x16xf32> to vector<16xf32>
    %266 = vector.shape_cast %265 : vector<16xf32> to vector<16x1xf32>
    %267 = tpu.reciprocal %266 {approx = true} : vector<16x1xf32> -> vector<16x1xf32>
    %268 = vector.broadcast %267 : vector<16x1xf32> to vector<16x16xf32>
    %269 = arith.mulf %264, %268 : vector<16x16xf32>
    %cst_101 = arith.constant dense<0.000000e+00> : vector<16x8xf32>
    %270 = tpu.matmul %269, %257, %cst_101 {dimension_numbers = #tpu.dot_dimension_numbers<[1], [0], [0], [1], [0, 0, 1, 1], [], []>} : vector<16x16xf32>, vector<16x8xf32>, vector<16x8xf32> -> vector<16x8xf32>
    %271 = vector.extract_strided_slice %252 {offsets = [0, 0], sizes = [8, 32], strides = [1, 1]} : vector<32x32xf32> to vector<8x32xf32>
    %cst_102 = arith.constant dense<0.000000e+00> : vector<16x32xf32>
    %272 = tpu.matmul %270, %271, %cst_102 {dimension_numbers = #tpu.dot_dimension_numbers<[1], [0], [0], [1], [0, 0, 1, 1], [], []>} : vector<16x8xf32>, vector<8x32xf32>, vector<16x32xf32> -> vector<16x32xf32>
    %273 = vector.broadcast %254 : vector<1x32xf32> to vector<16x32xf32>
    %274 = arith.addf %273, %272 : vector<16x32xf32>
    %275 = vector.extract_strided_slice %250 {offsets = [0, 8], sizes = [16, 8], strides = [1, 1]} : vector<16x96xf32> to vector<16x8xf32>
    %276 = vector.extract_strided_slice %250 {offsets = [0, 40], sizes = [16, 8], strides = [1, 1]} : vector<16x96xf32> to vector<16x8xf32>
    %277 = vector.extract_strided_slice %250 {offsets = [0, 72], sizes = [16, 8], strides = [1, 1]} : vector<16x96xf32> to vector<16x8xf32>
    %cst_103 = arith.constant dense<0.000000e+00> : vector<16x16xf32>
    %278 = tpu.matmul %275, %276, %cst_103 {dimension_numbers = #tpu.dot_dimension_numbers<[1], [1], [0], [0], [0, 0, 1, 0], [], []>} : vector<16x8xf32>, vector<16x8xf32>, vector<16x16xf32> -> vector<16x16xf32>
    %279 = arith.addf %278, %78 : vector<16x16xf32>
    %cst_104 = arith.constant dense<0xFF800000> : vector<16xf32>
    %280 = vector.multi_reduction <maximumf>, %279, %cst_104 [1] : vector<16x16xf32> to vector<16xf32>
    %281 = vector.shape_cast %280 : vector<16xf32> to vector<16x1xf32>
    %282 = vector.broadcast %281 : vector<16x1xf32> to vector<16x16xf32>
    %283 = arith.subf %279, %282 : vector<16x16xf32>
    %284 = math.exp %283 : vector<16x16xf32>
    %cst_105 = arith.constant dense<0.000000e+00> : vector<16xf32>
    %285 = vector.multi_reduction <add>, %284, %cst_105 [1] : vector<16x16xf32> to vector<16xf32>
    %286 = vector.shape_cast %285 : vector<16xf32> to vector<16x1xf32>
    %287 = tpu.reciprocal %286 {approx = true} : vector<16x1xf32> -> vector<16x1xf32>
    %288 = vector.broadcast %287 : vector<16x1xf32> to vector<16x16xf32>
    %289 = arith.mulf %284, %288 : vector<16x16xf32>
    %cst_106 = arith.constant dense<0.000000e+00> : vector<16x8xf32>
    %290 = tpu.matmul %289, %277, %cst_106 {dimension_numbers = #tpu.dot_dimension_numbers<[1], [0], [0], [1], [0, 0, 1, 1], [], []>} : vector<16x16xf32>, vector<16x8xf32>, vector<16x8xf32> -> vector<16x8xf32>
    %291 = vector.extract_strided_slice %252 {offsets = [8, 0], sizes = [8, 32], strides = [1, 1]} : vector<32x32xf32> to vector<8x32xf32>
    %cst_107 = arith.constant dense<0.000000e+00> : vector<16x32xf32>
    %292 = tpu.matmul %290, %291, %cst_107 {dimension_numbers = #tpu.dot_dimension_numbers<[1], [0], [0], [1], [0, 0, 1, 1], [], []>} : vector<16x8xf32>, vector<8x32xf32>, vector<16x32xf32> -> vector<16x32xf32>
    %293 = arith.addf %274, %292 : vector<16x32xf32>
    %294 = vector.extract_strided_slice %250 {offsets = [0, 16], sizes = [16, 8], strides = [1, 1]} : vector<16x96xf32> to vector<16x8xf32>
    %295 = vector.extract_strided_slice %250 {offsets = [0, 48], sizes = [16, 8], strides = [1, 1]} : vector<16x96xf32> to vector<16x8xf32>
    %296 = vector.extract_strided_slice %250 {offsets = [0, 80], sizes = [16, 8], strides = [1, 1]} : vector<16x96xf32> to vector<16x8xf32>
    %cst_108 = arith.constant dense<0.000000e+00> : vector<16x16xf32>
    %297 = tpu.matmul %294, %295, %cst_108 {dimension_numbers = #tpu.dot_dimension_numbers<[1], [1], [0], [0], [0, 0, 1, 0], [], []>} : vector<16x8xf32>, vector<16x8xf32>, vector<16x16xf32> -> vector<16x16xf32>
    %298 = arith.addf %297, %78 : vector<16x16xf32>
    %cst_109 = arith.constant dense<0xFF800000> : vector<16xf32>
    %299 = vector.multi_reduction <maximumf>, %298, %cst_109 [1] : vector<16x16xf32> to vector<16xf32>
    %300 = vector.shape_cast %299 : vector<16xf32> to vector<16x1xf32>
    %301 = vector.broadcast %300 : vector<16x1xf32> to vector<16x16xf32>
    %302 = arith.subf %298, %301 : vector<16x16xf32>
    %303 = math.exp %302 : vector<16x16xf32>
    %cst_110 = arith.constant dense<0.000000e+00> : vector<16xf32>
    %304 = vector.multi_reduction <add>, %303, %cst_110 [1] : vector<16x16xf32> to vector<16xf32>
    %305 = vector.shape_cast %304 : vector<16xf32> to vector<16x1xf32>
    %306 = tpu.reciprocal %305 {approx = true} : vector<16x1xf32> -> vector<16x1xf32>
    %307 = vector.broadcast %306 : vector<16x1xf32> to vector<16x16xf32>
    %308 = arith.mulf %303, %307 : vector<16x16xf32>
    %cst_111 = arith.constant dense<0.000000e+00> : vector<16x8xf32>
    %309 = tpu.matmul %308, %296, %cst_111 {dimension_numbers = #tpu.dot_dimension_numbers<[1], [0], [0], [1], [0, 0, 1, 1], [], []>} : vector<16x16xf32>, vector<16x8xf32>, vector<16x8xf32> -> vector<16x8xf32>
    %310 = vector.extract_strided_slice %252 {offsets = [16, 0], sizes = [8, 32], strides = [1, 1]} : vector<32x32xf32> to vector<8x32xf32>
    %cst_112 = arith.constant dense<0.000000e+00> : vector<16x32xf32>
    %311 = tpu.matmul %309, %310, %cst_112 {dimension_numbers = #tpu.dot_dimension_numbers<[1], [0], [0], [1], [0, 0, 1, 1], [], []>} : vector<16x8xf32>, vector<8x32xf32>, vector<16x32xf32> -> vector<16x32xf32>
    %312 = arith.addf %293, %311 : vector<16x32xf32>
    %313 = vector.extract_strided_slice %250 {offsets = [0, 24], sizes = [16, 8], strides = [1, 1]} : vector<16x96xf32> to vector<16x8xf32>
    %314 = vector.extract_strided_slice %250 {offsets = [0, 56], sizes = [16, 8], strides = [1, 1]} : vector<16x96xf32> to vector<16x8xf32>
    %315 = vector.extract_strided_slice %250 {offsets = [0, 88], sizes = [16, 8], strides = [1, 1]} : vector<16x96xf32> to vector<16x8xf32>
    %cst_113 = arith.constant dense<0.000000e+00> : vector<16x16xf32>
    %316 = tpu.matmul %313, %314, %cst_113 {dimension_numbers = #tpu.dot_dimension_numbers<[1], [1], [0], [0], [0, 0, 1, 0], [], []>} : vector<16x8xf32>, vector<16x8xf32>, vector<16x16xf32> -> vector<16x16xf32>
    %317 = arith.addf %316, %78 : vector<16x16xf32>
    %cst_114 = arith.constant dense<0xFF800000> : vector<16xf32>
    %318 = vector.multi_reduction <maximumf>, %317, %cst_114 [1] : vector<16x16xf32> to vector<16xf32>
    %319 = vector.shape_cast %318 : vector<16xf32> to vector<16x1xf32>
    %320 = vector.broadcast %319 : vector<16x1xf32> to vector<16x16xf32>
    %321 = arith.subf %317, %320 : vector<16x16xf32>
    %322 = math.exp %321 : vector<16x16xf32>
    %cst_115 = arith.constant dense<0.000000e+00> : vector<16xf32>
    %323 = vector.multi_reduction <add>, %322, %cst_115 [1] : vector<16x16xf32> to vector<16xf32>
    %324 = vector.shape_cast %323 : vector<16xf32> to vector<16x1xf32>
    %325 = tpu.reciprocal %324 {approx = true} : vector<16x1xf32> -> vector<16x1xf32>
    %326 = vector.broadcast %325 : vector<16x1xf32> to vector<16x16xf32>
    %327 = arith.mulf %322, %326 : vector<16x16xf32>
    %cst_116 = arith.constant dense<0.000000e+00> : vector<16x8xf32>
    %328 = tpu.matmul %327, %315, %cst_116 {dimension_numbers = #tpu.dot_dimension_numbers<[1], [0], [0], [1], [0, 0, 1, 1], [], []>} : vector<16x16xf32>, vector<16x8xf32>, vector<16x8xf32> -> vector<16x8xf32>
    %329 = vector.extract_strided_slice %252 {offsets = [24, 0], sizes = [8, 32], strides = [1, 1]} : vector<32x32xf32> to vector<8x32xf32>
    %cst_117 = arith.constant dense<0.000000e+00> : vector<16x32xf32>
    %330 = tpu.matmul %328, %329, %cst_117 {dimension_numbers = #tpu.dot_dimension_numbers<[1], [0], [0], [1], [0, 0, 1, 1], [], []>} : vector<16x8xf32>, vector<8x32xf32>, vector<16x32xf32> -> vector<16x32xf32>
    %331 = arith.addf %312, %330 : vector<16x32xf32>
    %332 = arith.addf %243, %331 : vector<16x32xf32>
    %c80 = arith.constant 80 : index
    %c0_118 = arith.constant 0 : index
    %333 = vector.load %arg1[%c80, %c0_118] : memref<84x32xf32, #tpu.memory_space<vmem>>, vector<1x32xf32>
    %c81 = arith.constant 81 : index
    %c0_119 = arith.constant 0 : index
    %334 = vector.load %arg1[%c81, %c0_119] : memref<84x32xf32, #tpu.memory_space<vmem>>, vector<1x32xf32>
    %cst_120 = arith.constant dense<0.000000e+00> : vector<16xf32>
    %335 = vector.multi_reduction <add>, %332, %cst_120 [1] : vector<16x32xf32> to vector<16xf32>
    %336 = vector.shape_cast %335 : vector<16xf32> to vector<16x1xf32>
    %cst_121 = arith.constant 3.200000e+01 : f32
    %337 = vector.broadcast %cst_121 : f32 to vector<16x1xf32>
    %338 = arith.divf %336, %337 : vector<16x1xf32>
    %339 = vector.broadcast %338 : vector<16x1xf32> to vector<16x32xf32>
    %340 = arith.subf %332, %339 : vector<16x32xf32>
    %341 = arith.mulf %340, %340 : vector<16x32xf32>
    %cst_122 = arith.constant dense<0.000000e+00> : vector<16xf32>
    %342 = vector.multi_reduction <add>, %341, %cst_122 [1] : vector<16x32xf32> to vector<16xf32>
    %343 = vector.shape_cast %342 : vector<16xf32> to vector<16x1xf32>
    %cst_123 = arith.constant 3.200000e+01 : f32
    %344 = vector.broadcast %cst_123 : f32 to vector<16x1xf32>
    %345 = arith.divf %343, %344 : vector<16x1xf32>
    %346 = vector.broadcast %338 : vector<16x1xf32> to vector<16x32xf32>
    %347 = arith.subf %332, %346 : vector<16x32xf32>
    %cst_124 = arith.constant 9.99999974E-6 : f32
    %348 = vector.broadcast %cst_124 : f32 to vector<16x1xf32>
    %349 = arith.addf %345, %348 : vector<16x1xf32>
    %350 = math.rsqrt %349 : vector<16x1xf32>
    %351 = vector.broadcast %350 : vector<16x1xf32> to vector<16x32xf32>
    %352 = arith.mulf %347, %351 : vector<16x32xf32>
    %353 = vector.broadcast %333 : vector<1x32xf32> to vector<16x32xf32>
    %354 = arith.mulf %352, %353 : vector<16x32xf32>
    %355 = vector.broadcast %334 : vector<1x32xf32> to vector<16x32xf32>
    %356 = arith.addf %354, %355 : vector<16x32xf32>
    %c1_125 = arith.constant 1 : index
    %c0_126 = arith.constant 0 : index
    %c0_127 = arith.constant 0 : index
    %357 = vector.load %arg4[%c1_125, %c0_126, %c0_127] : memref<2x33x64xf32, #tpu.memory_space<vmem>>, vector<1x32x64xf32>
    %358 = vector.shape_cast %357 : vector<1x32x64xf32> to vector<32x64xf32>
    %cst_128 = arith.constant dense<0.000000e+00> : vector<16x64xf32>
    %359 = tpu.matmul %356, %358, %cst_128 {dimension_numbers = #tpu.dot_dimension_numbers<[1], [0], [0], [1], [0, 0, 1, 1], [], []>} : vector<16x32xf32>, vector<32x64xf32>, vector<16x64xf32> -> vector<16x64xf32>
    %c1_129 = arith.constant 1 : index
    %c32_130 = arith.constant 32 : index
    %c0_131 = arith.constant 0 : index
    %360 = vector.load %arg4[%c1_129, %c32_130, %c0_131] : memref<2x33x64xf32, #tpu.memory_space<vmem>>, vector<1x1x64xf32>
    %361 = vector.shape_cast %360 : vector<1x1x64xf32> to vector<1x64xf32>
    %362 = vector.broadcast %361 : vector<1x64xf32> to vector<16x64xf32>
    %363 = arith.addf %359, %362 : vector<16x64xf32>
    %364 = arith.mulf %363, %363 : vector<16x64xf32>
    %365 = arith.mulf %363, %364 : vector<16x64xf32>
    %cst_132 = arith.constant 4.471500e-02 : f32
    %366 = vector.broadcast %cst_132 : f32 to vector<16x64xf32>
    %367 = arith.mulf %366, %365 : vector<16x64xf32>
    %368 = arith.addf %363, %367 : vector<16x64xf32>
    %cst_133 = arith.constant 0.797884583 : f32
    %369 = vector.broadcast %cst_133 : f32 to vector<16x64xf32>
    %370 = arith.mulf %369, %368 : vector<16x64xf32>
    %371 = math.tanh %370 : vector<16x64xf32>
    %cst_134 = arith.constant 1.000000e+00 : f32
    %372 = vector.broadcast %cst_134 : f32 to vector<16x64xf32>
    %373 = arith.addf %372, %371 : vector<16x64xf32>
    %cst_135 = arith.constant 5.000000e-01 : f32
    %374 = vector.broadcast %cst_135 : f32 to vector<16x64xf32>
    %375 = arith.mulf %374, %373 : vector<16x64xf32>
    %376 = arith.mulf %363, %375 : vector<16x64xf32>
    %c1_136 = arith.constant 1 : index
    %c0_137 = arith.constant 0 : index
    %c0_138 = arith.constant 0 : index
    %377 = vector.load %arg5[%c1_136, %c0_137, %c0_138] : memref<2x65x32xf32, #tpu.memory_space<vmem>>, vector<1x64x32xf32>
    %378 = vector.shape_cast %377 : vector<1x64x32xf32> to vector<64x32xf32>
    %cst_139 = arith.constant dense<0.000000e+00> : vector<16x32xf32>
    %379 = tpu.matmul %376, %378, %cst_139 {dimension_numbers = #tpu.dot_dimension_numbers<[1], [0], [0], [1], [0, 0, 1, 1], [], []>} : vector<16x64xf32>, vector<64x32xf32>, vector<16x32xf32> -> vector<16x32xf32>
    %c1_140 = arith.constant 1 : index
    %c64_141 = arith.constant 64 : index
    %c0_142 = arith.constant 0 : index
    %380 = vector.load %arg5[%c1_140, %c64_141, %c0_142] : memref<2x65x32xf32, #tpu.memory_space<vmem>>, vector<1x1x32xf32>
    %381 = vector.shape_cast %380 : vector<1x1x32xf32> to vector<1x32xf32>
    %382 = vector.broadcast %381 : vector<1x32xf32> to vector<16x32xf32>
    %383 = arith.addf %379, %382 : vector<16x32xf32>
    %384 = arith.addf %356, %383 : vector<16x32xf32>
    %c82 = arith.constant 82 : index
    %c0_143 = arith.constant 0 : index
    %385 = vector.load %arg1[%c82, %c0_143] : memref<84x32xf32, #tpu.memory_space<vmem>>, vector<1x32xf32>
    %c83 = arith.constant 83 : index
    %c0_144 = arith.constant 0 : index
    %386 = vector.load %arg1[%c83, %c0_144] : memref<84x32xf32, #tpu.memory_space<vmem>>, vector<1x32xf32>
    %cst_145 = arith.constant dense<0.000000e+00> : vector<16xf32>
    %387 = vector.multi_reduction <add>, %384, %cst_145 [1] : vector<16x32xf32> to vector<16xf32>
    %388 = vector.shape_cast %387 : vector<16xf32> to vector<16x1xf32>
    %cst_146 = arith.constant 3.200000e+01 : f32
    %389 = vector.broadcast %cst_146 : f32 to vector<16x1xf32>
    %390 = arith.divf %388, %389 : vector<16x1xf32>
    %391 = vector.broadcast %390 : vector<16x1xf32> to vector<16x32xf32>
    %392 = arith.subf %384, %391 : vector<16x32xf32>
    %393 = arith.mulf %392, %392 : vector<16x32xf32>
    %cst_147 = arith.constant dense<0.000000e+00> : vector<16xf32>
    %394 = vector.multi_reduction <add>, %393, %cst_147 [1] : vector<16x32xf32> to vector<16xf32>
    %395 = vector.shape_cast %394 : vector<16xf32> to vector<16x1xf32>
    %cst_148 = arith.constant 3.200000e+01 : f32
    %396 = vector.broadcast %cst_148 : f32 to vector<16x1xf32>
    %397 = arith.divf %395, %396 : vector<16x1xf32>
    %398 = vector.broadcast %390 : vector<16x1xf32> to vector<16x32xf32>
    %399 = arith.subf %384, %398 : vector<16x32xf32>
    %cst_149 = arith.constant 9.99999974E-6 : f32
    %400 = vector.broadcast %cst_149 : f32 to vector<16x1xf32>
    %401 = arith.addf %397, %400 : vector<16x1xf32>
    %402 = math.rsqrt %401 : vector<16x1xf32>
    %403 = vector.broadcast %402 : vector<16x1xf32> to vector<16x32xf32>
    %404 = arith.mulf %399, %403 : vector<16x32xf32>
    %405 = vector.broadcast %385 : vector<1x32xf32> to vector<16x32xf32>
    %406 = arith.mulf %404, %405 : vector<16x32xf32>
    %407 = vector.broadcast %386 : vector<1x32xf32> to vector<16x32xf32>
    %408 = arith.addf %406, %407 : vector<16x32xf32>
    %409 = vector.extract_strided_slice %408 {offsets = [0, 0], sizes = [1, 32], strides = [1, 1]} : vector<16x32xf32> to vector<1x32xf32>
    %410 = vector.extract_strided_slice %408 {offsets = [8, 0], sizes = [1, 32], strides = [1, 1]} : vector<16x32xf32> to vector<1x32xf32>
    %411 = tpu.concatenate %409, %410 in 0 : vector<1x32xf32>, vector<1x32xf32> -> vector<2x32xf32>
    %c0_150 = arith.constant 0 : index
    %c0_151 = arith.constant 0 : index
    %412 = vector.load %arg6[%c0_150, %c0_151] : memref<33x32xf32, #tpu.memory_space<vmem>>, vector<32x32xf32>
    %cst_152 = arith.constant dense<0.000000e+00> : vector<2x32xf32>
    %413 = tpu.matmul %411, %412, %cst_152 {dimension_numbers = #tpu.dot_dimension_numbers<[1], [0], [0], [1], [0, 0, 1, 1], [], []>} : vector<2x32xf32>, vector<32x32xf32>, vector<2x32xf32> -> vector<2x32xf32>
    %c32_153 = arith.constant 32 : index
    %c0_154 = arith.constant 0 : index
    %414 = vector.load %arg6[%c32_153, %c0_154] : memref<33x32xf32, #tpu.memory_space<vmem>>, vector<1x32xf32>
    %415 = vector.broadcast %414 : vector<1x32xf32> to vector<2x32xf32>
    %416 = arith.addf %413, %415 : vector<2x32xf32>
    %417 = math.tanh %416 : vector<2x32xf32>
    %c0_155 = arith.constant 0 : index
    %c0_156 = arith.constant 0 : index
    %418 = vector.load %arg7[%c0_155, %c0_156] : memref<33x128xf32, #tpu.memory_space<vmem>>, vector<32x128xf32>
    %cst_157 = arith.constant dense<0.000000e+00> : vector<2x128xf32>
    %419 = tpu.matmul %417, %418, %cst_157 {dimension_numbers = #tpu.dot_dimension_numbers<[1], [0], [0], [1], [0, 0, 1, 1], [], []>} : vector<2x32xf32>, vector<32x128xf32>, vector<2x128xf32> -> vector<2x128xf32>
    %c32_158 = arith.constant 32 : index
    %c0_159 = arith.constant 0 : index
    %420 = vector.load %arg7[%c32_158, %c0_159] : memref<33x128xf32, #tpu.memory_space<vmem>>, vector<1x128xf32>
    %421 = vector.broadcast %420 : vector<1x128xf32> to vector<2x128xf32>
    %422 = arith.addf %419, %421 : vector<2x128xf32>
    %423 = vector.extract_strided_slice %422 {offsets = [0, 0], sizes = [2, 1], strides = [1, 1]} : vector<2x128xf32> to vector<2x1xf32>
    %424 = vector.extract_strided_slice %422 {offsets = [0, 2], sizes = [2, 1], strides = [1, 1]} : vector<2x128xf32> to vector<2x1xf32>
    %425 = arith.maximumf %423, %424 : vector<2x1xf32>
    %426 = arith.subf %423, %425 : vector<2x1xf32>
    %427 = math.exp %426 : vector<2x1xf32>
    %428 = arith.subf %424, %425 : vector<2x1xf32>
    %429 = math.exp %428 : vector<2x1xf32>
    %430 = arith.addf %427, %429 : vector<2x1xf32>
    %431 = arith.divf %429, %430 : vector<2x1xf32>
    %432 = tpu.iota {dimensions = array<i32: 1>} : vector<2x128xi32>
    %c4_i32 = arith.constant 4 : i32
    %433 = vector.broadcast %c4_i32 : i32 to vector<2x128xi32>
    %434 = arith.cmpi eq, %432, %433 : vector<2x128xi32>
    %435 = vector.shape_cast %431 : vector<2x1xf32> to vector<2x1xf32>
    %436 = vector.broadcast %435 : vector<2x1xf32> to vector<2x128xf32>
    %437 = arith.select %434, %436, %422 : vector<2x128xi1>, vector<2x128xf32>
    %c0_160 = arith.constant 0 : index
    %c0_161 = arith.constant 0 : index
    %438 = vector.load %arg8[%c0_160, %c0_161] : memref<2x128xf32, #tpu.memory_space<vmem>>, vector<2x128xf32>
    tpu.vector_store %arg8[%c0_160, %c0_161], %437 {strides = array<i32>} : memref<2x128xf32, #tpu.memory_space<vmem>>, vector<2x128xf32>,
    return
  }
}

</mosaic_0001>

<bundles_post_ra>
// kernel: nli_forward.1
= control target key start
LH: loop header
LB: loop body
LE: loop exit
PB: predicated region body
PF: predicated region fallthrough
CT: control target
= control target key end

     0   :  { %v4174_v0 = vmov 0   ;;  %v4175_v9 = vmov 1   ;;  %v33_v16 = vlaneseq  ;;  %vm94_vm0 = vcmask 523264   ;;  %s4177_s21 = smov 96   ;;  %s4178_s22 = smov 88   ;;  %s4800_s0 = inlined_call_operand.vmem [shape: s32[16,2], index: 0, kind: input, shape index: {}]   ;;  %s4801_s1 = inlined_call_operand.vmem [shape: f32[84,32], index: 1, kind: input, shape index: {}]   ;;  %s4802_s2 = inlined_call_operand.vmem [shape: f32[2,33,96], index: 2, kind: input, shape index: {}]   ;;  %s4803_s3 = inlined_call_operand.vmem [shape: f32[2,33,32], index: 3, kind: input, shape index: {}]   ;;  %s4804_s4 = inlined_call_operand.vmem [shape: f32[2,33,64], index: 4, kind: input, shape index: {}]   ;;  %s4805_s5 = inlined_call_operand.vmem [shape: f32[2,65,32], index: 5, kind: input, shape index: {}]   ;;  %s4806_s6 = inlined_call_operand.vmem [shape: f32[33,32], index: 6, kind: input, shape index: {}]   ;;  %s4807_s7 = inlined_call_operand.vmem [shape: f32[33,128], index: 7, kind: input, shape index: {}]   ;;  %s4808_s8 = inlined_call_operand.vmem [shape: f32[2,128], index: 8, kind: output, shape index: {}]  }
   0x1   :  { %4069 = vset.pattern.permute.xlu0 %v4174_v0  ;;  %v29_v1 = vld [vmem:[%s4800_s0] sm:$0xff]  ;;  %v54_v2 = vld [vmem:[%s4801_s1 + $0x38] sm:$0xff]  ;;  %v53_v3 = vld [vmem:[%s4801_s1 + $0x30] sm:$0xff]  ;;  %4070 = vset.pattern.permute.xlu1 %v4175_v9  ;;  %v4176_v19 = vmov 0.0   ;;  %vm180_vm3 = vcmask 261120   ;;  %vm352_vm4 = vcmask 64512  }
   0x2   :  { %36 = vperm.xlu0 %4069, %v29_v1   ;;  %3775 = vmatprep.subr.mxu0 %v54_v2  ;;  %v30_v4 = vld [vmem:[%s4800_s0 + $0x8] sm:$0xff]  ;;  %v31_v7 = vcvt.s32.f32 %v29_v1  ;;  %v51_v8 = vld [vmem:[%s4801_s1 + $0x20] sm:$0xff]  ;;  %v50_v10 = vld [vmem:[%s4801_s1 + $0x18] sm:$0xff]  ;;  %v4268_v17 = vand.u32 127, %v33_v16  ;;  %s4179_s23 = smov 120   ;;  %vm436_vm9 = vcmask 130048  }
   0x3   :  { %3776 = vmatpush3.msra.mxu0 %v54_v2  ;;  %v52_v5 = vld [vmem:[%s4801_s1 + $0x28] sm:$0xff]  ;;  %v32_v6 = vcvt.s32.f32 %v30_v4  ;;  %v49_v13 = vld [vmem:[%s4801_s1 + $0x10] sm:$0xff]  ;;  %v47_v15 = vld [vmem:[%s4801_s1] sm:$0xff]  ;;  %s4181_s24 = smov 64   ;;  %s4182_s25 = smov 80   ;;  %vm4189_vm10 = vmmov 0  }
   0x4   :  { %3777 = vmatprep.subr.mxu0 %v53_v3  ;;  %82 = vperm.xlu1 %4070, %v31_v7   ;;  %v58_v11 = vsub.f32 1.0, %v31_v7  ;;  %v48_v14 = vld [vmem:[%s4801_s1 + $0x8] sm:$0xff]  ;;  %v55_v31 = vld [vmem:[%s4801_s1 + $0x40] sm:$0xff]  ;;  %v254_v54 = vld [vmem:[%s4802_s2 + $0x18] sm:$0xff]  ;;  %vm243_vm5 = vcmp.ge.s32.totalorder %v4268_v17, 8  ;;  %vm246_vm6 = vcmp.lt.s32.totalorder %v4268_v17, 16 }
   0x5   :  { %3778 = vmatpush3.msra.mxu0 %v53_v3  ;;  %v59_v12 = vsub.f32 1.0, %v32_v6  ;;  %v3498_v25 = vld [vmem:[%s4801_s1 + $0x49] ss:$0 sm:$0xff]  ;;  %v3497_v26 = vld [vmem:[%s4801_s1 + $0x48] ss:$0 sm:$0xff]  ;;  %v253_v55 = vld [vmem:[%s4802_s2 + $0x10] sm:$0xff]  ;;  %3794 = vmatprep.subr.mxu1 %v254_v54 }
   0x6   :  { %39 = vperm.xlu0 %4069, %v30_v4   ;;  %3779 = vmatprep.subr.mxu0 %v52_v5  ;;  %v252_v56 = vld [vmem:[%s4802_s2 + $0x8] sm:$0xff]  ;;  %v251_v57 = vld [vmem:[%s4802_s2] sm:$0xff]  ;;  %vm248_vm7 = vmand %vm243_vm5, %vm246_vm6  ;;  %vm232_vm8 = vcmp.lt.s32.totalorder %v4268_v17, 8  ;;  %s4183_s26 = smov 112   ;;  %s4184_s29 = smov 56   ;;  %vm3290_vm11 = vcmask 1040384  }
   0x7   :  { %3780 = vmatpush3.msra.mxu0 %v52_v5  ;;  %3795 = vmatpush3.msra.mxu1 %v254_v54  ;;  %v3501_v1 = vld [vmem:[%s4801_s1 + $0x4a] ss:$0 sm:$0xff]  ;;  %s4185_s30 = smov 72   ;;  %s4186_s9 = smov 104   ;;  %vm3483_vm12 = vcmp.eq.s32.totalorder %v4268_v17, 4 }
   0x8   :  { %3781 = vmatprep.subr.mxu0 %v51_v8  ;;  %66 = vperm.xlu1 %4070, %v58_v11   ;;  %s4187_s12 = smov 48   ;;  %s4188_s15 = smov 40  }
   0x9   :  { %3782 = vmatpush3.msra.mxu0 %v51_v8  ;;  %3796 = vmatprep.subr.mxu1 %v253_v55  ;;  %s4190_s0 = smov 126   ;;  %s4191_s18 = smov 2  }
   0xa   :  { %3783 = vmatprep.subr.mxu0 %v50_v10  ;;  %4071 = vset.pattern.permute.xlu0 %v4175_v9 }
   0xb   :  { %3784 = vmatpush3.msra.mxu0 %v50_v10  ;;  %71 = vperm.xlu0 %4071, %v59_v12   ;;  %v3503_v10 = vld [vmem:[%s4802_s2 + $0x20] ss:$0 sm:$0xff] }
   0xc   :  { %3785 = vmatprep.subr.mxu0 %v49_v13  ;;  %87 = vperm.xlu1 %4070, %v32_v6   ;;  %v3502_v6 = vld [vmem:[%s4801_s1 + $0x4b] ss:$0 sm:$0xff] }
   0xd   :  { %3786 = vmatpush3.msra.mxu0 %v49_v13  ;;  %3797 = vmatpush3.msra.mxu1 %v253_v55 }
   0xe   :  { %3787 = vmatprep.subr.mxu0 %v48_v14  ;;  %3798 = vmatprep.subr.mxu1 %v252_v56 }
   0xf   :  { %3788 = vmatpush3.msra.mxu0 %v48_v14  ;;  %3799 = vmatpush3.msra.mxu1 %v252_v56 }
  0x10   :  { %3789 = vmatprep.subr.mxu0 %v47_v15  ;;  %3800 = vmatprep.subr.mxu1 %v251_v57 }
  0x11   :  { %3790 = vmatpush3.msra.mxu0 %v47_v15  ;;  %3801 = vmatpush3.msra.mxu1 %v251_v57 }
  0x7d   :  { %v37_v18 = vpop.permute.xlu0 %36 }
  0x7e   :  { %vm41_vm1 = vcmp.eq.s32.totalorder %v37_v18, %v4268_v17 }
  0x7f   :  { %v3495_v20 = vsel %vm41_vm1, 1.0, %v4176_v19  ;;  %v83_v23 = vpop.permute.xlu1 %82 }
  0x80   :  { %3791 = vmatprep.mubr.msk.f32.mxu0 %vm94_vm0, %v3495_v20  ;;  %v90_v32 = vmul.f32 %v3498_v25, %v83_v23  ;;  %v4180_v23 = vmov -1e+30  }
  0x81   :  { %v40_v21 = vpop.permute.xlu0 %39 }
  0x82   :  { %vm42_vm2 = vcmp.eq.s32.totalorder %v40_v21, %v4268_v17 }
  0x83   :  { %v3496_v22 = vsel %vm42_vm2, 1.0, %v4176_v19  ;;  %v67_v24 = vpop.permute.xlu1 %66 }
  0x84   :  { %3792 = vmatmul.mubr.msk.f32.vlgmr.msra.gmra.mxu0 %vm94_vm0, %v3496_v22  ;;  %v74_v33 = vmul.f32 %v3497_v26, %v67_v24  ;;  %v4351_v24 = vsel %vm248_vm7, 0.0, %v4180_v23 }
  0x86   :  { %v72_v27 = vpop.permute.xlu0 %71  ;;  %v92_v38 = vadd.f32 %v90_v32, %v74_v33 }
  0x87   :  { %v88_v28 = vpop.permute.xlu1 %87  ;;  %v75_v29 = vmul.f32 %v3497_v26, %v72_v27  ;;  %v4353_v26 = vsel %vm232_vm8, 0.0, %v4180_v23 }
  0x88   :  { %v91_v30 = vmul.f32 %v3498_v25, %v88_v28 }
  0x8a   :  { %v93_v35 = vadd.f32 %v91_v30, %v75_v29 }
 0x144   :  { %v3793_v34 = vpop.f32.mrf.mxu0 }
 0x145   :  { %v173_v36 = vadd.f32 %v3793_v34, %v55_v31 }
 0x146   :  { %v167_v37 = vpop.f32.mrf.mxu0 }
 0x147   :  { %v168_v39 = vadd.f32 %v167_v37, %v55_v31  ;;  %v177_v40 = vadd.f32 %v173_v36, %v93_v35 }
 0x149   :  { %v184_v41 = vsel %vm180_vm3, %v177_v40, 0.0  ;;  %v176_v42 = vadd.f32 %v168_v39, %v92_v38 }
 0x14a   :  { %185 = vadd.xlane.f32.xlu0 %v184_v41 }
 0x14b   :  { %v181_v43 = vsel %vm180_vm3, %v176_v42, 0.0 }
 0x14c   :  { %182 = vadd.xlane.f32.xlu1 %v181_v43 }
 0x1d3   :  { %v186_v44 = vpop.xlane.xlu0 %185 }
 0x1d4   :  { %v189_v45 = vmul.f32 0.03125, %v186_v44 }
 0x1d5   :  { %v183_v46 = vpop.xlane.xlu1 %182 }
 0x1d6   :  { %v191_v47 = vsub.f32 %v177_v40, %v189_v45  ;;  %v188_v48 = vmul.f32 0.03125, %v183_v46 }
 0x1d8   :  { %v190_v49 = vsub.f32 %v176_v42, %v188_v48  ;;  %v193_v50 = vmul.f32 %v191_v47, %v191_v47 }
 0x1da   :  { %v197_v51 = vsel %vm180_vm3, %v193_v50, 0.0  ;;  %v192_v52 = vmul.f32 %v190_v49, %v190_v49 }
 0x1db   :  { %198 = vadd.xlane.f32.xlu1 %v197_v51 }
 0x1dc   :  { %v194_v53 = vsel %vm180_vm3, %v192_v52, 0.0 }
 0x1dd   :  { %195 = vadd.xlane.f32.xlu0 %v194_v53 }
 0x264   :  { %v199_v58 = vpop.xlane.xlu1 %198 }
 0x265   :  { %v201_v59 = vmul.f32 0.03125, %v199_v58 }
 0x266   :  { %v196_v60 = vpop.xlane.xlu0 %195 }
 0x267   :  { %v203_v61 = vadd.f32 1e-05, %v201_v59  ;;  %v200_v62 = vmul.f32 0.03125, %v196_v60 }
 0x269   :  { %4074 = vrsqrt.f32 %v203_v61  ;;  %v202_v63 = vadd.f32 1e-05, %v200_v62 }
 0x26b   :  { %4076 = vrsqrt.f32 %v202_v63 }
 0x276   :  { %v4075_v0 = vpop.eup %4074 }
 0x277   :  { %v207_v2 = vmul.f32 %v4075_v0, %v191_v47 }
 0x278   :  { %v4077_v3 = vpop.eup %4076 }
 0x279   :  { %v206_v4 = vmul.f32 %v4077_v3, %v190_v49  ;;  %v213_v5 = vmul.f32 %v3501_v1, %v207_v2 }
 0x27b   :  { %v212_v7 = vmul.f32 %v3501_v1, %v206_v4  ;;  %v4309_v9 = vadd.f32 %v3502_v6, %v213_v5 }
 0x27d   :  { %v4307_v8 = vadd.f32 %v3502_v6, %v212_v7  ;;  %v341_v6 = vld [vmem:[%s4803_s3] sm:$0xff] }
 0x27f   :  { %3802 = vmatprep.mubr.msk.f32.mxu1 %vm180_vm3, %v4307_v8 }
 0x280   :  { %3803 = vmatmul.mubr.msk.f32.vlgmr.msra.gmra.mxu1 %vm180_vm3, %v4309_v9 }
 0x340   :  { %v3804_v11 = vpop.f32.mrf.mxu1 }
 0x341   :  { %v4318_v12 = vadd.f32 %v3804_v11, %v3503_v10 }
 0x342   :  { %v332_v13 = vpop.f32.mrf.mxu1 }
 0x343   :  { %v4320_v14 = vadd.f32 %v3503_v10, %v332_v13  ;;  %350 = vrot.lane.b32.xlu0 %v4318_v12, %s4177_s21 }
 0x345   :  { %348 = vrot.lane.b32.xlu1 %v4320_v14, %s4177_s21  ;;  %3809 = vmatprep.mubr.msk.f32.mxu1 %vm352_vm4, %v4320_v14 }
 0x347   :  { %637 = vrot.lane.b32.xlu0 %v4320_v14, %s4178_s22 }
 0x349   :  { %639 = vrot.lane.b32.xlu1 %v4318_v12, %s4178_s22 }
 0x34b   :  { %635 = vrot.lane.b32.xlu0 %v4318_v12, %s4179_s23 }
 0x34d   :  { %633 = vrot.lane.b32.xlu1 %v4320_v14, %s4179_s23 }
 0x3b5   :  { %v351_v15 = vpop.permute.xlu0 %350 }
 0x3b6   :  { %3805 = vmatprep.subr.msk.mxu1 %vm352_vm4, %v351_v15 }
 0x3b7   :  { %3806 = vmatpush3.xpose.msk.msra.mxu1 %vm352_vm4, %v351_v15  ;;  %v349_v16 = vpop.permute.xlu1 %348 }
 0x3b8   :  { %3807 = vmatprep.subr.msk.mxu1 %vm352_vm4, %v349_v16 }
 0x3b9   :  { %v638_v20 = vpop.permute.xlu0 %637 }
 0x3bb   :  { %3808 = vmatpush3.xpose.msk.msra.mxu1 %vm352_vm4, %v349_v16  ;;  %v640_v18 = vpop.permute.xlu1 %639 }
 0x3bc   :  { %3824 = vmatprep.subr.msk.mxu0 %vm352_vm4, %v640_v18 }
 0x3bd   :  { %3825 = vmatpush3.xpose.msk.msra.mxu0 %vm352_vm4, %v640_v18  ;;  %v636_v22 = vpop.permute.xlu0 %635 }
 0x3be   :  { %3810 = vmatmul.mubr.msk.f32.vlgmr.msra.gmra.mxu1 %vm352_vm4, %v4318_v12  ;;  %3826 = vmatprep.subr.msk.mxu0 %vm352_vm4, %v638_v20 }
 0x3bf   :  { %v634_v21 = vpop.permute.xlu1 %633 }
 0x3c0   :  { %3828 = vmatprep.mubr.msk.f32.mxu0 %vm352_vm4, %v634_v21 }
 0x3c1   :  { %3827 = vmatpush3.xpose.msk.msra.mxu0 %vm352_vm4, %v638_v20 }
 0x3c4   :  { %3829 = vmatmul.mubr.msk.f32.vlgmr.msra.gmra.mxu0 %vm352_vm4, %v636_v22 }
 0x47e   :  { %v3811_v25 = vpop.f32.mrf.mxu1 }
 0x47f   :  { %v433_v27 = vadd.f32 %v3811_v25, %v4351_v24 }
 0x480   :  { %v427_v28 = vpop.f32.mrf.mxu1 }
 0x481   :  { %v428_v29 = vadd.f32 %v427_v28, %v4353_v26  ;;  %v440_v30 = vsel %vm436_vm9, %v433_v27, -inf }
 0x482   :  { %441 = vmax.xlane.f32.xlu0 %v440_v30 }
 0x483   :  { %v437_v31 = vsel %vm436_vm9, %v428_v29, -inf }
 0x484   :  { %438 = vmax.xlane.f32.xlu1 %v437_v31  ;;  %v3830_v42 = vpop.f32.mrf.mxu0 }
 0x485   :  { %v721_v45 = vadd.f32 %v3830_v42, %v4351_v24 }
 0x486   :  { %v715_v43 = vpop.f32.mrf.mxu0 }
 0x487   :  { %v716_v44 = vadd.f32 %v715_v43, %v4353_v26  ;;  %v727_v47 = vsel %vm436_vm9, %v721_v45, -inf }
 0x489   :  { %v724_v46 = vsel %vm436_vm9, %v716_v44, -inf }
 0x50b   :  { %v442_v32 = vpop.xlane.xlu0 %441 }
 0x50c   :  { %v444_v33 = vsub.f32 %v433_v27, %v442_v32 }
 0x50d   :  { %v439_v34 = vpop.xlane.xlu1 %438 }
 0x50e   :  { %v447_v35 = vmul.f32 1.442695, %v444_v33  ;;  %v443_v36 = vsub.f32 %v428_v29, %v439_v34 }
 0x510   :  { %4078 = vpow2.f32 %v447_v35  ;;  %v445_v37 = vmul.f32 1.442695, %v443_v36  ;;  %v342_v35 = vld [vmem:[%s4803_s3 + $0x8] sm:$0xff] }
 0x512   :  { %4080 = vpow2.f32 %v445_v37 }
 0x51d   :  { %v4079_v38 = vpop.eup %4078 }
 0x51e   :  { %v452_v39 = vsel %vm436_vm9, %v4079_v38, 0.0 }
 0x51f   :  { %v4081_v40 = vpop.eup %4080  ;;  %453 = vadd.xlane.f32.xlu1 %v452_v39 }
 0x520   :  { %v449_v41 = vsel %vm436_vm9, %v4081_v40, 0.0 }
 0x521   :  { %450 = vadd.xlane.f32.xlu0 %v449_v41 }
 0x530   :  { %459 = vrot.lane.b32.xlu1 %v4320_v14, %s4181_s24 }
 0x534   :  { %922 = vrot.lane.b32.xlu1 %v4318_v12, %s4182_s25 }
 0x537   :  { %461 = vrot.lane.b32.xlu0 %v4318_v12, %s4181_s24 }
 0x538   :  { %916 = vrot.lane.b32.xlu1 %v4320_v14, %s4183_s26 }
 0x53b   :  { %920 = vrot.lane.b32.xlu0 %v4320_v14, %s4182_s25 }
 0x53f   :  { %918 = vrot.lane.b32.xlu0 %v4318_v12, %s4183_s26 }
 0x55c   :  { %725 = vmax.xlane.f32.xlu1 %v724_v46 }
 0x55e   :  { %728 = vmax.xlane.f32.xlu0 %v727_v47 }
 0x5a8   :  { %v454_v48 = vpop.xlane.xlu1 %453 }
 0x5a9   :  { %4082 = vrcp.f32 %v454_v48 }
 0x5aa   :  { %v451_v49 = vpop.xlane.xlu0 %450 }
 0x5ab   :  { %4084 = vrcp.f32 %v451_v49 }
 0x5ac   :  { %v460_v50 = vpop.permute.xlu1 %459 }
 0x5ae   :  { %v462_v51 = vpop.permute.xlu0 %461 }
 0x5af   :  { %3812 = vmatprep.subr.mxu1 %v462_v51 }
 0x5b0   :  { %3813 = vmatpush3.msra.mxu1 %v462_v51  ;;  %v923_v52 = vpop.permute.xlu1 %922 }
 0x5b1   :  { %3814 = vmatprep.subr.mxu1 %v460_v50  ;;  %3843 = vmatprep.subr.msk.mxu0 %vm352_vm4, %v923_v52 }
 0x5b2   :  { %v921_v53 = vpop.permute.xlu0 %920  ;;  %3815 = vmatpush3.msra.mxu1 %v460_v50  ;;  %3844 = vmatpush3.xpose.msk.msra.mxu0 %vm352_vm4, %v923_v52 }
 0x5b3   :  { %3845 = vmatprep.subr.msk.mxu0 %vm352_vm4, %v921_v53  ;;  %3819 = vmatprep.subr.mxu1 %v341_v6 }
 0x5b4   :  { %v917_v54 = vpop.permute.xlu1 %916 }
 0x5b5   :  { %3847 = vmatprep.mubr.msk.f32.mxu0 %vm352_vm4, %v917_v54 }
 0x5b6   :  { %3846 = vmatpush3.xpose.msk.msra.mxu0 %vm352_vm4, %v921_v53  ;;  %v4083_v55 = vpop.eup %4082  ;;  %v919_v57 = vpop.permute.xlu0 %918 }
 0x5b7   :  { %v458_v59 = vmul.f32 %v4083_v55, %v4079_v38 }
 0x5b8   :  { %v4085_v56 = vpop.eup %4084 }
 0x5b9   :  { %3848 = vmatmul.mubr.msk.f32.vlgmr.msra.gmra.mxu0 %vm352_vm4, %v919_v57  ;;  %v457_v58 = vmul.f32 %v4085_v56, %v4081_v40 }
 0x5bb   :  { %3816 = vmatprep.mubr.msk.f32.mxu1 %vm436_vm9, %v457_v58 }
 0x5bc   :  { %3817 = vmatmul.mubr.msk.f32.vlgmr.msra.gmra.mxu1 %vm436_vm9, %v458_v59 }
 0x5bd   :  { %3820 = vmatpush3.msra.mxu1 %v341_v6 }
 0x5e5   :  { %v726_v60 = vpop.xlane.xlu1 %725 }
 0x5e6   :  { %v730_v61 = vsub.f32 %v716_v44, %v726_v60 }
 0x5e7   :  { %v729_v62 = vpop.xlane.xlu0 %728 }
 0x5e8   :  { %v732_v63 = vmul.f32 1.442695, %v730_v61  ;;  %v731_v0 = vsub.f32 %v721_v45, %v729_v62 }
 0x5ea   :  { %4086 = vpow2.f32 %v732_v63  ;;  %v734_v1 = vmul.f32 1.442695, %v731_v0 }
 0x5ec   :  { %4088 = vpow2.f32 %v734_v1 }
 0x5f7   :  { %v4087_v2 = vpop.eup %4086 }
 0x5f8   :  { %v736_v3 = vsel %vm436_vm9, %v4087_v2, 0.0 }
 0x5f9   :  { %v4089_v4 = vpop.eup %4088  ;;  %737 = vadd.xlane.f32.xlu0 %v736_v3 }
 0x5fa   :  { %v739_v5 = vsel %vm436_vm9, %v4089_v4, 0.0 }
 0x5fb   :  { %740 = vadd.xlane.f32.xlu1 %v739_v5 }
 0x60c   :  { %746 = vrot.lane.b32.xlu1 %v4320_v14, %s4184_s29 }
 0x60f   :  { %748 = vrot.lane.b32.xlu0 %v4318_v12, %s4184_s29 }
 0x610   :  { %1205 = vrot.lane.b32.xlu1 %v4318_v12, %s4185_s30 }
 0x613   :  { %1203 = vrot.lane.b32.xlu0 %v4320_v14, %s4185_s30 }
 0x614   :  { %1199 = vrot.lane.b32.xlu1 %v4320_v14, %s4186_s9 }
 0x617   :  { %1201 = vrot.lane.b32.xlu0 %v4318_v12, %s4186_s9 }
 0x679   :  { %v3849_v7 = vpop.f32.mrf.mxu0 }
 0x67a   :  { %v1004_v10 = vadd.f32 %v3849_v7, %v4351_v24 }
 0x67b   :  { %v998_v11 = vpop.f32.mrf.mxu0 }
 0x67c   :  { %v999_v13 = vadd.f32 %v998_v11, %v4353_v26  ;;  %v3818_v15 = vpop.f32.mrf.mxu1  ;;  %v1010_v16 = vsel %vm436_vm9, %v1004_v10, -inf }
 0x67d   :  { %1011 = vmax.xlane.f32.xlu0 %v1010_v16 }
 0x67e   :  { %v537_v18 = vpop.f32.mrf.mxu1  ;;  %v1007_v20 = vsel %vm436_vm9, %v999_v13, -inf }
 0x67f   :  { %3821 = vmatprep.mubr.msk.f32.mxu1 %vm352_vm4, %v537_v18  ;;  %1008 = vmax.xlane.f32.xlu1 %v1007_v20 }
 0x680   :  { %3822 = vmatmul.mubr.msk.f32.vlgmr.msra.gmra.mxu1 %vm352_vm4, %v3818_v15  ;;  %v3514_v15 = vld [vmem:[%s4803_s3 + $0x20] ss:$0 sm:$0xff] }
 0x682   :  { %v738_v21 = vpop.xlane.xlu0 %737 }
 0x683   :  { %4090 = vrcp.f32 %v738_v21 }
 0x684   :  { %v741_v22 = vpop.xlane.xlu1 %740 }
 0x685   :  { %4092 = vrcp.f32 %v741_v22 }
 0x686   :  { %v749_v23 = vpop.permute.xlu0 %748 }
 0x687   :  { %3831 = vmatprep.subr.mxu1 %v749_v23 }
 0x688   :  { %3832 = vmatpush3.msra.mxu1 %v749_v23  ;;  %v747_v25 = vpop.permute.xlu1 %746 }
 0x689   :  { %3833 = vmatprep.subr.mxu1 %v747_v25 }
 0x68a   :  { %3834 = vmatpush3.msra.mxu1 %v747_v25  ;;  %v1204_v28 = vpop.permute.xlu0 %1203 }
 0x68b   :  { %3838 = vmatprep.subr.mxu1 %v342_v35 }
 0x68c   :  { %v1206_v27 = vpop.permute.xlu1 %1205 }
 0x68d   :  { %3862 = vmatprep.subr.msk.mxu0 %vm352_vm4, %v1206_v27 }
 0x68e   :  { %3863 = vmatpush3.xpose.msk.msra.mxu0 %vm352_vm4, %v1206_v27  ;;  %v1202_v34 = vpop.permute.xlu0 %1201 }
 0x68f   :  { %3864 = vmatprep.subr.msk.mxu0 %vm352_vm4, %v1204_v28 }
 0x690   :  { %v4091_v29 = vpop.eup %4090  ;;  %v1200_v30 = vpop.permute.xlu1 %1199 }
 0x691   :  { %3866 = vmatprep.mubr.msk.f32.mxu0 %vm352_vm4, %v1200_v30  ;;  %v744_v31 = vmul.f32 %v4091_v29, %v4087_v2 }
 0x692   :  { %v4093_v32 = vpop.eup %4092  ;;  %3865 = vmatpush3.xpose.msk.msra.mxu0 %vm352_vm4, %v1204_v28 }
 0x693   :  { %3835 = vmatprep.mubr.msk.f32.mxu1 %vm436_vm9, %v744_v31  ;;  %v745_v33 = vmul.f32 %v4093_v32, %v4089_v4  ;;  %v344_v32 = vld [vmem:[%s4803_s3 + $0x18] sm:$0xff] }
 0x695   :  { %3836 = vmatmul.mubr.msk.f32.vlgmr.msra.gmra.mxu1 %vm436_vm9, %v745_v33  ;;  %3867 = vmatmul.mubr.msk.f32.vlgmr.msra.gmra.mxu0 %vm352_vm4, %v1202_v34 }
 0x696   :  { %3839 = vmatpush3.msra.mxu1 %v342_v35 }
 0x706   :  { %v1012_v36 = vpop.xlane.xlu0 %1011 }
 0x707   :  { %v1014_v37 = vsub.f32 %v1004_v10, %v1012_v36 }
 0x708   :  { %v1009_v38 = vpop.xlane.xlu1 %1008 }
 0x709   :  { %v1017_v39 = vmul.f32 1.442695, %v1014_v37  ;;  %v1013_v40 = vsub.f32 %v999_v13, %v1009_v38  ;;  %v343_v13 = vld [vmem:[%s4803_s3 + $0x10] sm:$0xff] }
 0x70b   :  { %4094 = vpow2.f32 %v1017_v39  ;;  %v1015_v41 = vmul.f32 1.442695, %v1013_v40 }
 0x70d   :  { %4096 = vpow2.f32 %v1015_v41 }
 0x718   :  { %v4095_v42 = vpop.eup %4094 }
 0x719   :  { %v1022_v43 = vsel %vm436_vm9, %v4095_v42, 0.0 }
 0x71a   :  { %v4097_v44 = vpop.eup %4096  ;;  %1023 = vadd.xlane.f32.xlu1 %v1022_v43 }
 0x71b   :  { %v1019_v45 = vsel %vm436_vm9, %v4097_v44, 0.0 }
 0x71c   :  { %1020 = vadd.xlane.f32.xlu0 %v1019_v45 }
 0x72b   :  { %1029 = vrot.lane.b32.xlu1 %v4320_v14, %s4187_s12 }
 0x732   :  { %1031 = vrot.lane.b32.xlu0 %v4318_v12, %s4187_s12 }
 0x740   :  { %v3823_v46 = vpop.f32.mrf.mxu1 }
 0x741   :  { %v632_v16 = vadd.f32 %v3823_v46, %v3514_v15 }
 0x742   :  { %v4425_v47 = vpop.f32.mrf.mxu1 }
 0x743   :  { %v631_v33 = vadd.f32 %v3514_v15, %v4425_v47 }
 0x755   :  { %v3837_v48 = vpop.f32.mrf.mxu1  ;;  %v3868_v49 = vpop.f32.mrf.mxu0 }
 0x756   :  { %v1287_v50 = vadd.f32 %v3868_v49, %v4351_v24 }
 0x757   :  { %v824_v51 = vpop.f32.mrf.mxu1  ;;  %v1281_v52 = vpop.f32.mrf.mxu0 }
 0x758   :  { %v1282_v53 = vadd.f32 %v1281_v52, %v4353_v26  ;;  %3840 = vmatprep.mubr.msk.f32.mxu1 %vm352_vm4, %v824_v51  ;;  %v1293_v54 = vsel %vm436_vm9, %v1287_v50, -inf }
 0x759   :  { %3841 = vmatmul.mubr.msk.f32.vlgmr.msra.gmra.mxu1 %vm352_vm4, %v3837_v48  ;;  %1294 = vmax.xlane.f32.xlu0 %v1293_v54 }
 0x75a   :  { %v1290_v55 = vsel %vm436_vm9, %v1282_v53, -inf }
 0x75b   :  { %1291 = vmax.xlane.f32.xlu1 %v1290_v55 }
 0x7a3   :  { %v1024_v56 = vpop.xlane.xlu1 %1023 }
 0x7a4   :  { %4098 = vrcp.f32 %v1024_v56 }
 0x7a5   :  { %v1021_v57 = vpop.xlane.xlu0 %1020 }
 0x7a6   :  { %4100 = vrcp.f32 %v1021_v57 }
 0x7a7   :  { %v1030_v59 = vpop.permute.xlu1 %1029 }
 0x7a9   :  { %v1032_v58 = vpop.permute.xlu0 %1031 }
 0x7aa   :  { %3850 = vmatprep.subr.mxu1 %v1032_v58 }
 0x7ab   :  { %3851 = vmatpush3.msra.mxu1 %v1032_v58  ;;  %v1526_v58 = vld [vmem:[%s4804_s4 + $0x10] sm:$0xff] }
 0x7ac   :  { %3852 = vmatprep.subr.mxu1 %v1030_v59 }
 0x7ad   :  { %3853 = vmatpush3.msra.mxu1 %v1030_v59  ;;  %v1525_v59 = vld [vmem:[%s4804_s4 + $0x8] sm:$0xff] }
 0x7ae   :  { %3857 = vmatprep.subr.mxu1 %v343_v13 }
 0x7b1   :  { %v4099_v60 = vpop.eup %4098 }
 0x7b2   :  { %v1028_v63 = vmul.f32 %v4099_v60, %v4095_v42  ;;  %v1524_v60 = vld [vmem:[%s4804_s4] sm:$0xff] }
 0x7b3   :  { %v4101_v61 = vpop.eup %4100 }
 0x7b4   :  { %v1027_v62 = vmul.f32 %v4101_v61, %v4097_v44 }
 0x7b6   :  { %3854 = vmatprep.mubr.msk.f32.mxu1 %vm436_vm9, %v1027_v62 }
 0x7b7   :  { %3855 = vmatmul.mubr.msk.f32.vlgmr.msra.gmra.mxu1 %vm436_vm9, %v1028_v63 }
 0x7b8   :  { %3858 = vmatpush3.msra.mxu1 %v343_v13 }
 0x7e2   :  { %v1295_v0 = vpop.xlane.xlu0 %1294 }
 0x7e3   :  { %v1297_v1 = vsub.f32 %v1287_v50, %v1295_v0 }
 0x7e4   :  { %v1292_v2 = vpop.xlane.xlu1 %1291 }
 0x7e5   :  { %v1300_v3 = vmul.f32 1.442695, %v1297_v1  ;;  %v1296_v4 = vsub.f32 %v1282_v53, %v1292_v2 }
 0x7e7   :  { %4102 = vpow2.f32 %v1300_v3  ;;  %v1298_v5 = vmul.f32 1.442695, %v1296_v4  ;;  %v3539_v4 = vld [vmem:[%s4801_s1 + $0x4c] ss:$0 sm:$0xff] }
 0x7e9   :  { %4104 = vpow2.f32 %v1298_v5 }
 0x7f4   :  { %v4103_v6 = vpop.eup %4102 }
 0x7f5   :  { %v1305_v7 = vsel %vm436_vm9, %v4103_v6, 0.0 }
 0x7f6   :  { %v4105_v10 = vpop.eup %4104  ;;  %1306 = vadd.xlane.f32.xlu1 %v1305_v7 }
 0x7f7   :  { %v1302_v11 = vsel %vm436_vm9, %v4105_v10, 0.0 }
 0x7f8   :  { %1303 = vadd.xlane.f32.xlu0 %v1302_v11  ;;  %v3540_v11 = vld [vmem:[%s4801_s1 + $0x4d] ss:$0 sm:$0xff] }
 0x807   :  { %1312 = vrot.lane.b32.xlu1 %v4320_v14, %s4188_s15 }
 0x80e   :  { %1314 = vrot.lane.b32.xlu0 %v4318_v12, %s4188_s15 }
 0x819   :  { %v3842_v18 = vpop.f32.mrf.mxu1 }
 0x81a   :  { %v915_v20 = vadd.f32 %v3842_v18, %v632_v16  ;;  %v1639_v18 = vld [vmem:[%s4805_s5 + $0x38] sm:$0xff] }
 0x81b   :  { %v905_v21 = vpop.f32.mrf.mxu1 }
 0x81c   :  { %v914_v35 = vadd.f32 %v905_v21, %v631_v33  ;;  %v1637_v21 = vld [vmem:[%s4805_s5 + $0x28] sm:$0xff] }
 0x877   :  { %v3856_v22 = vpop.f32.mrf.mxu1 }
 0x879   :  { %v1107_v23 = vpop.f32.mrf.mxu1 }
 0x87a   :  { %3859 = vmatprep.mubr.msk.f32.mxu1 %vm352_vm4, %v1107_v23  ;;  %v1635_v23 = vld [vmem:[%s4805_s5 + $0x18] sm:$0xff] }
 0x87b   :  { %3860 = vmatmul.mubr.msk.f32.vlgmr.msra.gmra.mxu1 %vm352_vm4, %v3856_v22  ;;  %v1636_v22 = vld [vmem:[%s4805_s5 + $0x20] sm:$0xff] }
 0x87f   :  { %v1307_v25 = vpop.xlane.xlu1 %1306 }
 0x880   :  { %4106 = vrcp.f32 %v1307_v25  ;;  %v1634_v25 = vld [vmem:[%s4805_s5 + $0x10] sm:$0xff] }
 0x881   :  { %v1304_v14 = vpop.xlane.xlu0 %1303 }
 0x882   :  { %4108 = vrcp.f32 %v1304_v14  ;;  %v1633_v14 = vld [vmem:[%s4805_s5 + $0x8] sm:$0xff] }
 0x883   :  { %v1313_v12 = vpop.permute.xlu1 %1312 }
 0x885   :  { %v1315_v27 = vpop.permute.xlu0 %1314 }
 0x886   :  { %3869 = vmatprep.subr.mxu1 %v1315_v27 }
 0x887   :  { %3870 = vmatpush3.msra.mxu1 %v1315_v27  ;;  %v1632_v27 = vld [vmem:[%s4805_s5] sm:$0xff] }
 0x888   :  { %3871 = vmatprep.subr.mxu1 %v1313_v12 }
 0x889   :  { %3872 = vmatpush3.msra.mxu1 %v1313_v12  ;;  %v3541_v12 = vld [vmem:[%s4804_s4 + $0x20] ss:$0 sm:$0xff] }
 0x88a   :  { %3876 = vmatprep.subr.mxu1 %v344_v32 }
 0x88d   :  { %v4107_v28 = vpop.eup %4106 }
 0x88e   :  { %v1311_v31 = vmul.f32 %v4107_v28, %v4103_v6 }
 0x88f   :  { %v4109_v29 = vpop.eup %4108 }
 0x890   :  { %v1310_v30 = vmul.f32 %v4109_v29, %v4105_v10 }
 0x892   :  { %3873 = vmatprep.mubr.msk.f32.mxu1 %vm436_vm9, %v1310_v30 }
 0x893   :  { %3874 = vmatmul.mubr.msk.f32.vlgmr.msra.gmra.mxu1 %vm436_vm9, %v1311_v31 }
 0x894   :  { %3877 = vmatpush3.msra.mxu1 %v344_v32 }
 0x895   :  { %3892 = vmatprep.subr.mxu1 %v1639_v18 }
 0x93b   :  { %v3861_v34 = vpop.f32.mrf.mxu1 }
 0x93c   :  { %v1198_v36 = vadd.f32 %v3861_v34, %v915_v20  ;;  %v1638_v20 = vld [vmem:[%s4805_s5 + $0x30] sm:$0xff] }
 0x93d   :  { %v1188_v37 = vpop.f32.mrf.mxu1 }
 0x93e   :  { %v1197_v38 = vadd.f32 %v1188_v37, %v914_v35 }
 0x953   :  { %v3875_v39 = vpop.f32.mrf.mxu1 }
 0x955   :  { %v1390_v40 = vpop.f32.mrf.mxu1 }
 0x956   :  { %3878 = vmatprep.mubr.msk.f32.mxu1 %vm352_vm4, %v1390_v40 }
 0x957   :  { %3879 = vmatmul.mubr.msk.f32.vlgmr.msra.gmra.mxu1 %vm352_vm4, %v3875_v39 }
 0x958   :  { %3893 = vmatpush3.msra.mxu1 %v1639_v18 }
 0x959   :  { %3894 = vmatprep.subr.mxu1 %v1638_v20 }
 0x95a   :  { %3895 = vmatpush3.msra.mxu1 %v1638_v20  ;;  %v3547_v20 = vld [vmem:[%s4801_s1 + $0x4e] ss:$0 sm:$0xff] }
 0x95b   :  { %3896 = vmatprep.subr.mxu1 %v1637_v21 }
 0x95c   :  { %3897 = vmatpush3.msra.mxu1 %v1637_v21 }
 0x95d   :  { %3898 = vmatprep.subr.mxu1 %v1636_v22 }
 0x95e   :  { %3899 = vmatpush3.msra.mxu1 %v1636_v22 }
 0x95f   :  { %3900 = vmatprep.subr.mxu1 %v1635_v23 }
 0x960   :  { %3901 = vmatpush3.msra.mxu1 %v1635_v23 }
 0x961   :  { %3902 = vmatprep.subr.mxu1 %v1634_v25 }
 0x962   :  { %3903 = vmatpush3.msra.mxu1 %v1634_v25 }
 0x963   :  { %3904 = vmatprep.subr.mxu1 %v1633_v14 }
 0x964   :  { %3905 = vmatpush3.msra.mxu1 %v1633_v14  ;;  %v3548_v14 = vld [vmem:[%s4801_s1 + $0x4f] ss:$0 sm:$0xff] }
 0x965   :  { %3906 = vmatprep.subr.mxu1 %v1632_v27 }
 0x966   :  { %3907 = vmatpush3.msra.mxu1 %v1632_v27 }
 0xa17   :  { %v3880_v41 = vpop.f32.mrf.mxu1 }
 0xa18   :  { %v1481_v42 = vadd.f32 %v3880_v41, %v1198_v36 }
 0xa19   :  { %v1471_v43 = vpop.f32.mrf.mxu1 }
 0xa1a   :  { %v1480_v44 = vadd.f32 %v1471_v43, %v1197_v38  ;;  %v1483_v45 = vadd.f32 %v1481_v42, %v4309_v9 }
 0xa1c   :  { %v1489_v46 = vsel %vm180_vm3, %v1483_v45, 0.0  ;;  %v1482_v47 = vadd.f32 %v1480_v44, %v4307_v8  ;;  %v1527_v8 = vld [vmem:[%s4804_s4 + $0x18] sm:$0xff] }
 0xa1d   :  { %1490 = vadd.xlane.f32.xlu0 %v1489_v46  ;;  %3881 = vmatprep.subr.mxu0 %v1527_v8 }
 0xa1e   :  { %v1486_v48 = vsel %vm180_vm3, %v1482_v47, 0.0  ;;  %3882 = vmatpush3.msra.mxu0 %v1527_v8 }
 0xa1f   :  { %1487 = vadd.xlane.f32.xlu1 %v1486_v48  ;;  %3883 = vmatprep.subr.mxu0 %v1526_v58 }
 0xa20   :  { %3884 = vmatpush3.msra.mxu0 %v1526_v58 }
 0xa21   :  { %3885 = vmatprep.subr.mxu0 %v1525_v59 }
 0xa22   :  { %3886 = vmatpush3.msra.mxu0 %v1525_v59 }
 0xa23   :  { %3887 = vmatprep.subr.mxu0 %v1524_v60 }
 0xa24   :  { %3888 = vmatpush3.msra.mxu0 %v1524_v60 }
 0xaa6   :  { %v1491_v49 = vpop.xlane.xlu0 %1490 }
 0xaa7   :  { %v1493_v50 = vmul.f32 0.03125, %v1491_v49 }
 0xaa8   :  { %v1488_v51 = vpop.xlane.xlu1 %1487 }
 0xaa9   :  { %v1495_v52 = vsub.f32 %v1483_v45, %v1493_v50  ;;  %v1492_v53 = vmul.f32 0.03125, %v1488_v51  ;;  %v3544_v50 = vld [vmem:[%s4805_s5 + $0x40] ss:$0 sm:$0xff] }
 0xaab   :  { %v1494_v54 = vsub.f32 %v1482_v47, %v1492_v53  ;;  %v1497_v55 = vmul.f32 %v1495_v52, %v1495_v52 }
 0xaad   :  { %v1501_v56 = vsel %vm180_vm3, %v1497_v55, 0.0  ;;  %v1496_v57 = vmul.f32 %v1494_v54, %v1494_v54 }
 0xaae   :  { %1502 = vadd.xlane.f32.xlu1 %v1501_v56 }
 0xaaf   :  { %v1498_v9 = vsel %vm180_vm3, %v1496_v57, 0.0 }
 0xab0   :  { %1499 = vadd.xlane.f32.xlu0 %v1498_v9 }
 0xb37   :  { %v1503_v61 = vpop.xlane.xlu1 %1502 }
 0xb38   :  { %v1505_v62 = vmul.f32 0.03125, %v1503_v61 }
 0xb39   :  { %v1500_v63 = vpop.xlane.xlu0 %1499 }
 0xb3a   :  { %v1507_v0 = vadd.f32 1e-05, %v1505_v62  ;;  %v1504_v1 = vmul.f32 0.03125, %v1500_v63 }
 0xb3c   :  { %4110 = vrsqrt.f32 %v1507_v0  ;;  %v1506_v2 = vadd.f32 1e-05, %v1504_v1 }
 0xb3e   :  { %4112 = vrsqrt.f32 %v1506_v2 }
 0xb49   :  { %v4111_v3 = vpop.eup %4110 }
 0xb4a   :  { %v1511_v5 = vmul.f32 %v4111_v3, %v1495_v52  ;;  %v3552_v3 = vld [vmem:[%s4802_s2 + $0x40] sm:$0xff] }
 0xb4b   :  { %v4113_v6 = vpop.eup %4112  ;;  %3911 = vmatprep.subr.mxu0 %v3552_v3 }
 0xb4c   :  { %v1510_v7 = vmul.f32 %v4113_v6, %v1494_v54  ;;  %v1517_v10 = vmul.f32 %v3539_v4, %v1511_v5  ;;  %v3550_v5 = vld [vmem:[%s4802_s2 + $0x30] sm:$0xff]  ;;  %v3549_v6 = vld [vmem:[%s4802_s2 + $0x28] sm:$0xff] }
 0xb4e   :  { %v1516_v13 = vmul.f32 %v3539_v4, %v1510_v7  ;;  %v1523_v16 = vadd.f32 %v3540_v11, %v1517_v10  ;;  %v3551_v4 = vld [vmem:[%s4802_s2 + $0x38] sm:$0xff] }
 0xb50   :  { %v4481_v15 = vadd.f32 %v3540_v11, %v1516_v13 }
 0xb52   :  { %3889 = vmatprep.mubr.msk.f32.mxu0 %vm180_vm3, %v4481_v15 }
 0xb53   :  { %3890 = vmatmul.mubr.msk.f32.vlgmr.msra.gmra.mxu0 %vm180_vm3, %v1523_v16 }
 0xb54   :  { %3912 = vmatpush3.msra.mxu0 %v3552_v3 }
 0xb55   :  { %3913 = vmatprep.subr.mxu0 %v3551_v4 }
 0xb56   :  { %3914 = vmatpush3.msra.mxu0 %v3551_v4 }
 0xb57   :  { %3915 = vmatprep.subr.mxu0 %v3550_v5 }
 0xb58   :  { %3916 = vmatpush3.msra.mxu0 %v3550_v5 }
 0xb59   :  { %3917 = vmatprep.subr.mxu0 %v3549_v6 }
 0xb5a   :  { %3918 = vmatpush3.msra.mxu0 %v3549_v6 }
 0xc13   :  { %v3891_v28 = vpop.f32.mrf.mxu0 }
 0xc14   :  { %v1611_v29 = vadd.f32 %v3891_v28, %v3541_v12 }
 0xc15   :  { %v1605_v30 = vpop.f32.mrf.mxu0 }
 0xc16   :  { %v1615_v31 = vmul.f32 %v1611_v29, %v1611_v29  ;;  %v1606_v32 = vadd.f32 %v3541_v12, %v1605_v30 }
 0xc18   :  { %v1617_v33 = vmul.f32 %v1615_v31, %v1611_v29  ;;  %v1614_v34 = vmul.f32 %v1606_v32, %v1606_v32 }
 0xc1a   :  { %v1619_v35 = vmul.f32 0.044715, %v1617_v33  ;;  %v1616_v36 = vmul.f32 %v1614_v34, %v1606_v32 }
 0xc1c   :  { %v1621_v37 = vadd.f32 %v1619_v35, %v1611_v29  ;;  %v1618_v38 = vmul.f32 0.044715, %v1616_v36 }
 0xc1e   :  { %v1623_v39 = vmul.f32 0.7978846, %v1621_v37  ;;  %v1620_v40 = vadd.f32 %v1618_v38, %v1606_v32 }
 0xc20   :  { %4114 = vtanh.f32 %v1623_v39  ;;  %v1622_v41 = vmul.f32 0.7978846, %v1620_v40 }
 0xc22   :  { %4116 = vtanh.f32 %v1622_v41 }
 0xc2d   :  { %v4115_v42 = vpop.eup %4114 }
 0xc2e   :  { %v1627_v43 = vadd.f32 1.0, %v4115_v42 }
 0xc2f   :  { %v4117_v44 = vpop.eup %4116 }
 0xc30   :  { %v1626_v45 = vadd.f32 1.0, %v4117_v44  ;;  %v1629_v46 = vmul.f32 0.5, %v1627_v43 }
 0xc32   :  { %v1628_v47 = vmul.f32 0.5, %v1626_v45  ;;  %v1631_v49 = vmul.f32 %v1629_v46, %v1611_v29  ;;  %v3554_v29 = vld [vmem:[%s4802_s2 + $0x48] ss:$0 sm:$0xff] }
 0xc34   :  { %v1630_v48 = vmul.f32 %v1628_v47, %v1606_v32 }
 0xc36   :  { %3908 = vmatprep.mubr.msk.f32.mxu1 %vm94_vm0, %v1630_v48 }
 0xc37   :  { %3909 = vmatmul.mubr.msk.f32.vlgmr.msra.gmra.mxu1 %vm94_vm0, %v1631_v49 }
 0xcf7   :  { %v3910_v51 = vpop.f32.mrf.mxu1 }
 0xcf8   :  { %v1723_v52 = vadd.f32 %v3910_v51, %v3544_v50 }
 0xcf9   :  { %v1717_v53 = vpop.f32.mrf.mxu1 }
 0xcfa   :  { %v1718_v54 = vadd.f32 %v3544_v50, %v1717_v53  ;;  %v1727_v55 = vadd.f32 %v1723_v52, %v1523_v16 }
 0xcfc   :  { %v1733_v56 = vsel %vm180_vm3, %v1727_v55, 0.0  ;;  %v1726_v57 = vadd.f32 %v1718_v54, %v4481_v15 }
 0xcfd   :  { %1734 = vadd.xlane.f32.xlu1 %v1733_v56 }
 0xcfe   :  { %v1730_v9 = vsel %vm180_vm3, %v1726_v57, 0.0 }
 0xcff   :  { %1731 = vadd.xlane.f32.xlu0 %v1730_v9 }
 0xd86   :  { %v1735_v8 = vpop.xlane.xlu1 %1734 }
 0xd87   :  { %v1737_v58 = vmul.f32 0.03125, %v1735_v8 }
 0xd88   :  { %v1732_v59 = vpop.xlane.xlu0 %1731 }
 0xd89   :  { %v1739_v60 = vsub.f32 %v1727_v55, %v1737_v58  ;;  %v1736_v61 = vmul.f32 0.03125, %v1732_v59 }
 0xd8b   :  { %v1738_v62 = vsub.f32 %v1726_v57, %v1736_v61  ;;  %v1741_v63 = vmul.f32 %v1739_v60, %v1739_v60 }
 0xd8d   :  { %v1745_v0 = vsel %vm180_vm3, %v1741_v63, 0.0  ;;  %v1740_v1 = vmul.f32 %v1738_v62, %v1738_v62 }
 0xd8e   :  { %1746 = vadd.xlane.f32.xlu1 %v1745_v0 }
 0xd8f   :  { %v1742_v2 = vsel %vm180_vm3, %v1740_v1, 0.0 }
 0xd90   :  { %1743 = vadd.xlane.f32.xlu0 %v1742_v2 }
 0xe17   :  { %v1747_v7 = vpop.xlane.xlu1 %1746 }
 0xe18   :  { %v1749_v10 = vmul.f32 0.03125, %v1747_v7 }
 0xe19   :  { %v1744_v11 = vpop.xlane.xlu0 %1743 }
 0xe1a   :  { %v1751_v13 = vadd.f32 1e-05, %v1749_v10  ;;  %v1748_v15 = vmul.f32 0.03125, %v1744_v11 }
 0xe1c   :  { %4118 = vrsqrt.f32 %v1751_v13  ;;  %v1750_v16 = vadd.f32 1e-05, %v1748_v15 }
 0xe1e   :  { %4120 = vrsqrt.f32 %v1750_v16 }
 0xe29   :  { %v4119_v18 = vpop.eup %4118 }
 0xe2a   :  { %v1755_v21 = vmul.f32 %v4119_v18, %v1739_v60 }
 0xe2b   :  { %v4121_v22 = vpop.eup %4120 }
 0xe2c   :  { %v1754_v23 = vmul.f32 %v4121_v22, %v1738_v62  ;;  %v1761_v25 = vmul.f32 %v3547_v20, %v1755_v21 }
 0xe2e   :  { %v1760_v27 = vmul.f32 %v3547_v20, %v1754_v23  ;;  %v4543_v28 = vadd.f32 %v3548_v14, %v1761_v25  ;;  %v3557_v25 = vld [vmem:[%s4803_s3 + $0x28] sm:$0xff] }
 0xe30   :  { %v4541_v12 = vadd.f32 %v3548_v14, %v1760_v27 }
 0xe32   :  { %3919 = vmatprep.mubr.msk.f32.mxu0 %vm180_vm3, %v4541_v12 }
 0xe33   :  { %3920 = vmatmul.mubr.msk.f32.vlgmr.msra.gmra.mxu0 %vm180_vm3, %v4543_v28 }
 0xef3   :  { %v3921_v30 = vpop.f32.mrf.mxu0 }
 0xef4   :  { %v4552_v31 = vadd.f32 %v3921_v30, %v3554_v29 }
 0xef5   :  { %v1850_v32 = vpop.f32.mrf.mxu0 }
 0xef6   :  { %v4554_v33 = vadd.f32 %v3554_v29, %v1850_v32  ;;  %1869 = vrot.lane.b32.xlu0 %v4552_v31, %s4177_s21 }
 0xef8   :  { %1867 = vrot.lane.b32.xlu1 %v4554_v33, %s4177_s21  ;;  %3926 = vmatprep.mubr.msk.f32.mxu0 %vm352_vm4, %v4554_v33 }
 0xefa   :  { %2154 = vrot.lane.b32.xlu0 %v4554_v33, %s4178_s22 }
 0xefc   :  { %2156 = vrot.lane.b32.xlu1 %v4552_v31, %s4178_s22 }
 0xefe   :  { %2152 = vrot.lane.b32.xlu0 %v4552_v31, %s4179_s23 }
 0xf00   :  { %2150 = vrot.lane.b32.xlu1 %v4554_v33, %s4179_s23 }
 0xf68   :  { %v1870_v34 = vpop.permute.xlu0 %1869 }
 0xf69   :  { %3922 = vmatprep.subr.msk.mxu0 %vm352_vm4, %v1870_v34 }
 0xf6a   :  { %3923 = vmatpush3.xpose.msk.msra.mxu0 %vm352_vm4, %v1870_v34  ;;  %v1868_v35 = vpop.permute.xlu1 %1867 }
 0xf6b   :  { %3924 = vmatprep.subr.msk.mxu0 %vm352_vm4, %v1868_v35 }
 0xf6c   :  { %v2155_v37 = vpop.permute.xlu0 %2154 }
 0xf6e   :  { %3925 = vmatpush3.xpose.msk.msra.mxu0 %vm352_vm4, %v1868_v35  ;;  %v2157_v36 = vpop.permute.xlu1 %2156 }
 0xf6f   :  { %3941 = vmatprep.subr.msk.mxu0 %vm352_vm4, %v2157_v36 }
 0xf70   :  { %v2153_v39 = vpop.permute.xlu0 %2152 }
 0xf71   :  { %3927 = vmatmul.mubr.msk.f32.vlgmr.msra.gmra.mxu0 %vm352_vm4, %v4552_v31 }
 0xf72   :  { %v2151_v38 = vpop.permute.xlu1 %2150  ;;  %3942 = vmatpush3.xpose.msk.msra.mxu0 %vm352_vm4, %v2157_v36 }
 0xf73   :  { %3943 = vmatprep.subr.msk.mxu0 %vm352_vm4, %v2155_v37  ;;  %3945 = vmatprep.mubr.msk.f32.mxu0 %vm352_vm4, %v2151_v38 }
 0xf76   :  { %3944 = vmatpush3.xpose.msk.msra.mxu0 %vm352_vm4, %v2155_v37 }
 0xf79   :  { %3946 = vmatmul.mubr.msk.f32.vlgmr.msra.gmra.mxu0 %vm352_vm4, %v2153_v39 }
0x1031   :  { %v3928_v40 = vpop.f32.mrf.mxu0 }
0x1032   :  { %v1951_v41 = vadd.f32 %v3928_v40, %v4351_v24 }
0x1033   :  { %v1945_v42 = vpop.f32.mrf.mxu0 }
0x1034   :  { %v1946_v43 = vadd.f32 %v1945_v42, %v4353_v26  ;;  %v1957_v44 = vsel %vm436_vm9, %v1951_v41, -inf }
0x1035   :  { %1958 = vmax.xlane.f32.xlu0 %v1957_v44 }
0x1036   :  { %v1954_v45 = vsel %vm436_vm9, %v1946_v43, -inf }
0x1037   :  { %1955 = vmax.xlane.f32.xlu1 %v1954_v45 }
0x1039   :  { %v3947_v56 = vpop.f32.mrf.mxu0 }
0x103a   :  { %v2238_v8 = vadd.f32 %v3947_v56, %v4351_v24 }
0x103b   :  { %v2232_v57 = vpop.f32.mrf.mxu0 }
0x103c   :  { %v2233_v9 = vadd.f32 %v2232_v57, %v4353_v26  ;;  %v2244_v59 = vsel %vm436_vm9, %v2238_v8, -inf }
0x103e   :  { %v2241_v58 = vsel %vm436_vm9, %v2233_v9, -inf }
0x10be   :  { %v1959_v46 = vpop.xlane.xlu0 %1958 }
0x10bf   :  { %v1961_v47 = vsub.f32 %v1951_v41, %v1959_v46 }
0x10c0   :  { %v1956_v48 = vpop.xlane.xlu1 %1955 }
0x10c1   :  { %v1964_v49 = vmul.f32 1.442695, %v1961_v47  ;;  %v1960_v50 = vsub.f32 %v1946_v43, %v1956_v48 }
0x10c3   :  { %4122 = vpow2.f32 %v1964_v49  ;;  %v1962_v51 = vmul.f32 1.442695, %v1960_v50  ;;  %v3558_v49 = vld [vmem:[%s4803_s3 + $0x30] sm:$0xff] }
0x10c5   :  { %4124 = vpow2.f32 %v1962_v51 }
0x10d0   :  { %v4123_v52 = vpop.eup %4122 }
0x10d1   :  { %v1969_v53 = vsel %vm436_vm9, %v4123_v52, 0.0 }
0x10d2   :  { %v4125_v54 = vpop.eup %4124  ;;  %1970 = vadd.xlane.f32.xlu1 %v1969_v53 }
0x10d3   :  { %v1966_v55 = vsel %vm436_vm9, %v4125_v54, 0.0 }
0x10d4   :  { %1967 = vadd.xlane.f32.xlu0 %v1966_v55 }
0x10e3   :  { %1976 = vrot.lane.b32.xlu1 %v4554_v33, %s4181_s24 }
0x10e7   :  { %2439 = vrot.lane.b32.xlu1 %v4552_v31, %s4182_s25 }
0x10ea   :  { %1978 = vrot.lane.b32.xlu0 %v4552_v31, %s4181_s24 }
0x10eb   :  { %2433 = vrot.lane.b32.xlu1 %v4554_v33, %s4183_s26 }
0x10ee   :  { %2437 = vrot.lane.b32.xlu0 %v4554_v33, %s4182_s25 }
0x10f2   :  { %2435 = vrot.lane.b32.xlu0 %v4552_v31, %s4183_s26 }
0x110f   :  { %2242 = vmax.xlane.f32.xlu1 %v2241_v58 }
0x1111   :  { %2245 = vmax.xlane.f32.xlu0 %v2244_v59 }
0x115b   :  { %v1971_v60 = vpop.xlane.xlu1 %1970 }
0x115c   :  { %4126 = vrcp.f32 %v1971_v60 }
0x115d   :  { %v1968_v61 = vpop.xlane.xlu0 %1967 }
0x115e   :  { %4128 = vrcp.f32 %v1968_v61 }
0x115f   :  { %v1977_v62 = vpop.permute.xlu1 %1976 }
0x1161   :  { %v1979_v63 = vpop.permute.xlu0 %1978 }
0x1162   :  { %3929 = vmatprep.subr.mxu1 %v1979_v63 }
0x1163   :  { %3930 = vmatpush3.msra.mxu1 %v1979_v63  ;;  %v2440_v0 = vpop.permute.xlu1 %2439 }
0x1164   :  { %3931 = vmatprep.subr.mxu1 %v1977_v62  ;;  %3960 = vmatprep.subr.msk.mxu0 %vm352_vm4, %v2440_v0 }
0x1165   :  { %v2438_v1 = vpop.permute.xlu0 %2437  ;;  %3932 = vmatpush3.msra.mxu1 %v1977_v62  ;;  %3961 = vmatpush3.xpose.msk.msra.mxu0 %vm352_vm4, %v2440_v0 }
0x1166   :  { %3962 = vmatprep.subr.msk.mxu0 %vm352_vm4, %v2438_v1  ;;  %3936 = vmatprep.subr.mxu1 %v3557_v25 }
0x1167   :  { %v2434_v2 = vpop.permute.xlu1 %2433 }
0x1168   :  { %3964 = vmatprep.mubr.msk.f32.mxu0 %vm352_vm4, %v2434_v2 }
0x1169   :  { %3963 = vmatpush3.xpose.msk.msra.mxu0 %vm352_vm4, %v2438_v1  ;;  %v4127_v3 = vpop.eup %4126  ;;  %v2436_v5 = vpop.permute.xlu0 %2435 }
0x116a   :  { %v1975_v7 = vmul.f32 %v4127_v3, %v4123_v52 }
0x116b   :  { %v4129_v4 = vpop.eup %4128 }
0x116c   :  { %3965 = vmatmul.mubr.msk.f32.vlgmr.msra.gmra.mxu0 %vm352_vm4, %v2436_v5  ;;  %v1974_v6 = vmul.f32 %v4129_v4, %v4125_v54 }
0x116e   :  { %3933 = vmatprep.mubr.msk.f32.mxu1 %vm436_vm9, %v1974_v6 }
0x116f   :  { %3934 = vmatmul.mubr.msk.f32.vlgmr.msra.gmra.mxu1 %vm436_vm9, %v1975_v7 }
0x1170   :  { %3937 = vmatpush3.msra.mxu1 %v3557_v25 }
0x1198   :  { %v2243_v10 = vpop.xlane.xlu1 %2242 }
0x1199   :  { %v2247_v11 = vsub.f32 %v2233_v9, %v2243_v10 }
0x119a   :  { %v2246_v13 = vpop.xlane.xlu0 %2245 }
0x119b   :  { %v2249_v15 = vmul.f32 1.442695, %v2247_v11  ;;  %v2248_v16 = vsub.f32 %v2238_v8, %v2246_v13 }
0x119d   :  { %4130 = vpow2.f32 %v2249_v15  ;;  %v2251_v18 = vmul.f32 1.442695, %v2248_v16 }
0x119f   :  { %4132 = vpow2.f32 %v2251_v18 }
0x11aa   :  { %v4131_v20 = vpop.eup %4130 }
0x11ab   :  { %v2253_v21 = vsel %vm436_vm9, %v4131_v20, 0.0 }
0x11ac   :  { %v4133_v22 = vpop.eup %4132  ;;  %2254 = vadd.xlane.f32.xlu0 %v2253_v21 }
0x11ad   :  { %v2256_v23 = vsel %vm436_vm9, %v4133_v22, 0.0 }
0x11ae   :  { %2257 = vadd.xlane.f32.xlu1 %v2256_v23 }
0x11bf   :  { %2263 = vrot.lane.b32.xlu1 %v4554_v33, %s4184_s29 }
0x11c2   :  { %2265 = vrot.lane.b32.xlu0 %v4552_v31, %s4184_s29 }
0x11c3   :  { %2722 = vrot.lane.b32.xlu1 %v4552_v31, %s4185_s30 }
0x11c6   :  { %2720 = vrot.lane.b32.xlu0 %v4554_v33, %s4185_s30 }
0x11c7   :  { %2716 = vrot.lane.b32.xlu1 %v4554_v33, %s4186_s9 }
0x11ca   :  { %2718 = vrot.lane.b32.xlu0 %v4552_v31, %s4186_s9 }
0x122c   :  { %v3966_v14 = vpop.f32.mrf.mxu0 }
0x122d   :  { %v2521_v27 = vadd.f32 %v3966_v14, %v4351_v24 }
0x122e   :  { %v2515_v29 = vpop.f32.mrf.mxu0 }
0x122f   :  { %v2516_v30 = vadd.f32 %v2515_v29, %v4353_v26  ;;  %v3935_v32 = vpop.f32.mrf.mxu1  ;;  %v2527_v34 = vsel %vm436_vm9, %v2521_v27, -inf  ;;  %v3570_v29 = vld [vmem:[%s4803_s3 + $0x48] ss:$0 sm:$0xff] }
0x1230   :  { %2528 = vmax.xlane.f32.xlu0 %v2527_v34 }
0x1231   :  { %v2054_v35 = vpop.f32.mrf.mxu1  ;;  %v2524_v36 = vsel %vm436_vm9, %v2516_v30, -inf }
0x1232   :  { %3938 = vmatprep.mubr.msk.f32.mxu1 %vm352_vm4, %v2054_v35  ;;  %2525 = vmax.xlane.f32.xlu1 %v2524_v36 }
0x1233   :  { %3939 = vmatmul.mubr.msk.f32.vlgmr.msra.gmra.mxu1 %vm352_vm4, %v3935_v32 }
0x1235   :  { %v2255_v37 = vpop.xlane.xlu0 %2254 }
0x1236   :  { %4134 = vrcp.f32 %v2255_v37 }
0x1237   :  { %v2258_v38 = vpop.xlane.xlu1 %2257 }
0x1238   :  { %4136 = vrcp.f32 %v2258_v38 }
0x1239   :  { %v2266_v39 = vpop.permute.xlu0 %2265 }
0x123a   :  { %3948 = vmatprep.subr.mxu1 %v2266_v39 }
0x123b   :  { %3949 = vmatpush3.msra.mxu1 %v2266_v39  ;;  %v2264_v40 = vpop.permute.xlu1 %2263 }
0x123c   :  { %3950 = vmatprep.subr.mxu1 %v2264_v40 }
0x123d   :  { %3951 = vmatpush3.msra.mxu1 %v2264_v40  ;;  %v2721_v42 = vpop.permute.xlu0 %2720 }
0x123e   :  { %3955 = vmatprep.subr.mxu1 %v3558_v49 }
0x123f   :  { %v2723_v41 = vpop.permute.xlu1 %2722 }
0x1240   :  { %3979 = vmatprep.subr.msk.mxu0 %vm352_vm4, %v2723_v41 }
0x1241   :  { %3980 = vmatpush3.xpose.msk.msra.mxu0 %vm352_vm4, %v2723_v41  ;;  %v2719_v48 = vpop.permute.xlu0 %2718 }
0x1242   :  { %3981 = vmatprep.subr.msk.mxu0 %vm352_vm4, %v2721_v42 }
0x1243   :  { %v4135_v43 = vpop.eup %4134  ;;  %v2717_v44 = vpop.permute.xlu1 %2716 }
0x1244   :  { %3983 = vmatprep.mubr.msk.f32.mxu0 %vm352_vm4, %v2717_v44  ;;  %v2261_v45 = vmul.f32 %v4135_v43, %v4131_v20  ;;  %v3560_v44 = vld [vmem:[%s4803_s3 + $0x40] sm:$0xff] }
0x1245   :  { %v4137_v46 = vpop.eup %4136  ;;  %3982 = vmatpush3.xpose.msk.msra.mxu0 %vm352_vm4, %v2721_v42 }
0x1246   :  { %3952 = vmatprep.mubr.msk.f32.mxu1 %vm436_vm9, %v2261_v45  ;;  %v2262_v47 = vmul.f32 %v4137_v46, %v4133_v22 }
0x1248   :  { %3953 = vmatmul.mubr.msk.f32.vlgmr.msra.gmra.mxu1 %vm436_vm9, %v2262_v47  ;;  %3984 = vmatmul.mubr.msk.f32.vlgmr.msra.gmra.mxu0 %vm352_vm4, %v2719_v48 }
0x1249   :  { %3956 = vmatpush3.msra.mxu1 %v3558_v49 }
0x12b9   :  { %v2529_v50 = vpop.xlane.xlu0 %2528 }
0x12ba   :  { %v2531_v51 = vsub.f32 %v2521_v27, %v2529_v50  ;;  %v3559_v27 = vld [vmem:[%s4803_s3 + $0x38] sm:$0xff] }
0x12bb   :  { %v2526_v52 = vpop.xlane.xlu1 %2525 }
0x12bc   :  { %v2534_v53 = vmul.f32 1.442695, %v2531_v51  ;;  %v2530_v54 = vsub.f32 %v2516_v30, %v2526_v52 }
0x12be   :  { %4138 = vpow2.f32 %v2534_v53  ;;  %v2532_v55 = vmul.f32 1.442695, %v2530_v54 }
0x12c0   :  { %4140 = vpow2.f32 %v2532_v55 }
0x12cb   :  { %v4139_v56 = vpop.eup %4138 }
0x12cc   :  { %v2539_v57 = vsel %vm436_vm9, %v4139_v56, 0.0 }
0x12cd   :  { %v4141_v9 = vpop.eup %4140  ;;  %2540 = vadd.xlane.f32.xlu1 %v2539_v57 }
0x12ce   :  { %v2536_v8 = vsel %vm436_vm9, %v4141_v9, 0.0 }
0x12cf   :  { %2537 = vadd.xlane.f32.xlu0 %v2536_v8 }
0x12de   :  { %2546 = vrot.lane.b32.xlu1 %v4554_v33, %s4187_s12 }
0x12e5   :  { %2548 = vrot.lane.b32.xlu0 %v4552_v31, %s4187_s12 }
0x12f3   :  { %v3940_v58 = vpop.f32.mrf.mxu1 }
0x12f4   :  { %v2149_v30 = vadd.f32 %v3940_v58, %v3570_v29 }
0x12f5   :  { %v4652_v59 = vpop.f32.mrf.mxu1 }
0x12f6   :  { %v2148_v45 = vadd.f32 %v3570_v29, %v4652_v59  ;;  %v3612_v29 = vld [vmem:[%s4805_s5 + $0x80] sm:$0xff] }
0x1308   :  { %v3954_v60 = vpop.f32.mrf.mxu1  ;;  %v3985_v61 = vpop.f32.mrf.mxu0 }
0x1309   :  { %v2804_v62 = vadd.f32 %v3985_v61, %v4351_v24 }
0x130a   :  { %v2341_v63 = vpop.f32.mrf.mxu1  ;;  %v2798_v0 = vpop.f32.mrf.mxu0 }
0x130b   :  { %v2799_v1 = vadd.f32 %v2798_v0, %v4353_v26  ;;  %3957 = vmatprep.mubr.msk.f32.mxu1 %vm352_vm4, %v2341_v63  ;;  %v2810_v2 = vsel %vm436_vm9, %v2804_v62, -inf }
0x130c   :  { %3958 = vmatmul.mubr.msk.f32.vlgmr.msra.gmra.mxu1 %vm352_vm4, %v3954_v60  ;;  %2811 = vmax.xlane.f32.xlu0 %v2810_v2 }
0x130d   :  { %v2807_v3 = vsel %vm436_vm9, %v2799_v1, -inf }
0x130e   :  { %2808 = vmax.xlane.f32.xlu1 %v2807_v3 }
0x1356   :  { %v2541_v4 = vpop.xlane.xlu1 %2540 }
0x1357   :  { %4142 = vrcp.f32 %v2541_v4  ;;  %v3599_v4 = vld [vmem:[%s4804_s4 + $0x38] sm:$0xff] }
0x1358   :  { %v2538_v5 = vpop.xlane.xlu0 %2537 }
0x1359   :  { %4144 = vrcp.f32 %v2538_v5  ;;  %v3598_v5 = vld [vmem:[%s4804_s4 + $0x30] sm:$0xff] }
0x135a   :  { %v2547_v24 = vpop.permute.xlu1 %2546 }
0x135c   :  { %v2549_v6 = vpop.permute.xlu0 %2548 }
0x135d   :  { %3967 = vmatprep.subr.mxu1 %v2549_v6 }
0x135e   :  { %3968 = vmatpush3.msra.mxu1 %v2549_v6  ;;  %v3597_v6 = vld [vmem:[%s4804_s4 + $0x28] sm:$0xff] }
0x135f   :  { %3969 = vmatprep.subr.mxu1 %v2547_v24 }
0x1360   :  { %3970 = vmatpush3.msra.mxu1 %v2547_v24 }
0x1361   :  { %3974 = vmatprep.subr.mxu1 %v3559_v27 }
0x1364   :  { %v4143_v26 = vpop.eup %4142 }
0x1365   :  { %v2545_v11 = vmul.f32 %v4143_v26, %v4139_v56 }
0x1366   :  { %v4145_v7 = vpop.eup %4144 }
0x1367   :  { %v2544_v10 = vmul.f32 %v4145_v7, %v4141_v9 }
0x1369   :  { %3971 = vmatprep.mubr.msk.f32.mxu1 %vm436_vm9, %v2544_v10 }
0x136a   :  { %3972 = vmatmul.mubr.msk.f32.vlgmr.msra.gmra.mxu1 %vm436_vm9, %v2545_v11 }
0x136b   :  { %3975 = vmatpush3.msra.mxu1 %v3559_v27 }
0x1395   :  { %v2812_v13 = vpop.xlane.xlu0 %2811 }
0x1396   :  { %v2814_v15 = vsub.f32 %v2804_v62, %v2812_v13 }
0x1397   :  { %v2809_v16 = vpop.xlane.xlu1 %2808 }
0x1398   :  { %v2817_v18 = vmul.f32 1.442695, %v2814_v15  ;;  %v2813_v20 = vsub.f32 %v2799_v1, %v2809_v16  ;;  %v3595_v16 = vld [vmem:[%s4801_s1 + $0x50] ss:$0 sm:$0xff] }
0x139a   :  { %4146 = vpow2.f32 %v2817_v18  ;;  %v2815_v21 = vmul.f32 1.442695, %v2813_v20 }
0x139c   :  { %4148 = vpow2.f32 %v2815_v21 }
0x13a7   :  { %v4147_v22 = vpop.eup %4146 }
0x13a8   :  { %v2822_v23 = vsel %vm436_vm9, %v4147_v22, 0.0 }
0x13a9   :  { %v4149_v25 = vpop.eup %4148  ;;  %2823 = vadd.xlane.f32.xlu1 %v2822_v23  ;;  %v3596_v23 = vld [vmem:[%s4801_s1 + $0x51] ss:$0 sm:$0xff] }
0x13aa   :  { %v2819_v14 = vsel %vm436_vm9, %v4149_v25, 0.0 }
0x13ab   :  { %2820 = vadd.xlane.f32.xlu0 %v2819_v14 }
0x13ba   :  { %2829 = vrot.lane.b32.xlu1 %v4554_v33, %s4188_s15 }
0x13c1   :  { %2831 = vrot.lane.b32.xlu0 %v4552_v31, %s4188_s15 }
0x13cc   :  { %v3959_v32 = vpop.f32.mrf.mxu1 }
0x13cd   :  { %v2432_v34 = vadd.f32 %v3959_v32, %v2149_v30  ;;  %v3611_v30 = vld [vmem:[%s4805_s5 + $0x78] sm:$0xff]  ;;  %v3610_v32 = vld [vmem:[%s4805_s5 + $0x70] sm:$0xff] }
0x13ce   :  { %v2422_v35 = vpop.f32.mrf.mxu1 }
0x13cf   :  { %v2431_v47 = vadd.f32 %v2422_v35, %v2148_v45  ;;  %v3608_v35 = vld [vmem:[%s4805_s5 + $0x60] sm:$0xff] }
0x142a   :  { %v3973_v36 = vpop.f32.mrf.mxu1 }
0x142c   :  { %v2624_v37 = vpop.f32.mrf.mxu1 }
0x142d   :  { %3976 = vmatprep.mubr.msk.f32.mxu1 %vm352_vm4, %v2624_v37  ;;  %v3606_v37 = vld [vmem:[%s4805_s5 + $0x50] sm:$0xff] }
0x142e   :  { %3977 = vmatmul.mubr.msk.f32.vlgmr.msra.gmra.mxu1 %vm352_vm4, %v3973_v36  ;;  %v3607_v36 = vld [vmem:[%s4805_s5 + $0x58] sm:$0xff] }
0x1432   :  { %v2824_v38 = vpop.xlane.xlu1 %2823 }
0x1433   :  { %4150 = vrcp.f32 %v2824_v38  ;;  %v3605_v38 = vld [vmem:[%s4805_s5 + $0x48] sm:$0xff] }
0x1434   :  { %v2821_v33 = vpop.xlane.xlu0 %2820 }
0x1435   :  { %4152 = vrcp.f32 %v2821_v33  ;;  %v3602_v33 = vld [vmem:[%s4804_s4 + $0x48] ss:$0 sm:$0xff] }
0x1436   :  { %v2830_v31 = vpop.permute.xlu1 %2829 }
0x1438   :  { %v2832_v39 = vpop.permute.xlu0 %2831 }
0x1439   :  { %3986 = vmatprep.subr.mxu1 %v2832_v39 }
0x143a   :  { %3987 = vmatpush3.msra.mxu1 %v2832_v39 }
0x143b   :  { %3988 = vmatprep.subr.mxu1 %v2830_v31 }
0x143c   :  { %3989 = vmatpush3.msra.mxu1 %v2830_v31 }
0x143d   :  { %3993 = vmatprep.subr.mxu1 %v3560_v44 }
0x1440   :  { %v4151_v40 = vpop.eup %4150 }
0x1441   :  { %v2828_v43 = vmul.f32 %v4151_v40, %v4147_v22 }
0x1442   :  { %v4153_v41 = vpop.eup %4152 }
0x1443   :  { %v2827_v42 = vmul.f32 %v4153_v41, %v4149_v25 }
0x1445   :  { %3990 = vmatprep.mubr.msk.f32.mxu1 %vm436_vm9, %v2827_v42 }
0x1446   :  { %3991 = vmatmul.mubr.msk.f32.vlgmr.msra.gmra.mxu1 %vm436_vm9, %v2828_v43 }
0x1447   :  { %3994 = vmatpush3.msra.mxu1 %v3560_v44 }
0x1448   :  { %4009 = vmatprep.subr.mxu1 %v3612_v29 }
0x14ee   :  { %v3978_v46 = vpop.f32.mrf.mxu1 }
0x14ef   :  { %v2715_v48 = vadd.f32 %v3978_v46, %v2432_v34  ;;  %v3609_v34 = vld [vmem:[%s4805_s5 + $0x68] sm:$0xff] }
0x14f0   :  { %v2705_v49 = vpop.f32.mrf.mxu1 }
0x14f1   :  { %v2714_v50 = vadd.f32 %v2705_v49, %v2431_v47 }
0x1506   :  { %v3992_v51 = vpop.f32.mrf.mxu1 }
0x1508   :  { %v2907_v52 = vpop.f32.mrf.mxu1 }
0x1509   :  { %3995 = vmatprep.mubr.msk.f32.mxu1 %vm352_vm4, %v2907_v52 }
0x150a   :  { %3996 = vmatmul.mubr.msk.f32.vlgmr.msra.gmra.mxu1 %vm352_vm4, %v3992_v51 }
0x150b   :  { %4010 = vmatpush3.msra.mxu1 %v3612_v29 }
0x150c   :  { %4011 = vmatprep.subr.mxu1 %v3611_v30 }
0x150d   :  { %4012 = vmatpush3.msra.mxu1 %v3611_v30 }
0x150e   :  { %4013 = vmatprep.subr.mxu1 %v3610_v32 }
0x150f   :  { %4014 = vmatpush3.msra.mxu1 %v3610_v32  ;;  %v3618_v32 = vld [vmem:[%s4801_s1 + $0x53] ss:$0 sm:$0xff] }
0x1510   :  { %4015 = vmatprep.subr.mxu1 %v3609_v34 }
0x1511   :  { %4016 = vmatpush3.msra.mxu1 %v3609_v34 }
0x1512   :  { %4017 = vmatprep.subr.mxu1 %v3608_v35 }
0x1513   :  { %4018 = vmatpush3.msra.mxu1 %v3608_v35 }
0x1514   :  { %4019 = vmatprep.subr.mxu1 %v3607_v36 }
0x1515   :  { %4020 = vmatpush3.msra.mxu1 %v3607_v36 }
0x1516   :  { %4021 = vmatprep.subr.mxu1 %v3606_v37 }
0x1517   :  { %4022 = vmatpush3.msra.mxu1 %v3606_v37 }
0x1518   :  { %4023 = vmatprep.subr.mxu1 %v3605_v38 }
0x1519   :  { %4024 = vmatpush3.msra.mxu1 %v3605_v38 }
0x15ca   :  { %v3997_v53 = vpop.f32.mrf.mxu1 }
0x15cb   :  { %v2998_v54 = vadd.f32 %v3997_v53, %v2715_v48 }
0x15cc   :  { %v2988_v55 = vpop.f32.mrf.mxu1 }
0x15cd   :  { %v2997_v56 = vadd.f32 %v2988_v55, %v2714_v50  ;;  %v3000_v57 = vadd.f32 %v2998_v54, %v4543_v28 }
0x15cf   :  { %v3006_v9 = vsel %vm180_vm3, %v3000_v57, 0.0  ;;  %v2999_v8 = vadd.f32 %v2997_v56, %v4541_v12  ;;  %v3600_v12 = vld [vmem:[%s4804_s4 + $0x40] sm:$0xff] }
0x15d0   :  { %3007 = vadd.xlane.f32.xlu0 %v3006_v9  ;;  %3998 = vmatprep.subr.mxu0 %v3600_v12 }
0x15d1   :  { %v3003_v58 = vsel %vm180_vm3, %v2999_v8, 0.0  ;;  %3999 = vmatpush3.msra.mxu0 %v3600_v12 }
0x15d2   :  { %3004 = vadd.xlane.f32.xlu1 %v3003_v58  ;;  %4000 = vmatprep.subr.mxu0 %v3599_v4  ;;  %v3614_v58 = vld [vmem:[%s4805_s5 + $0x88] ss:$0 sm:$0xff] }
0x15d3   :  { %4001 = vmatpush3.msra.mxu0 %v3599_v4 }
0x15d4   :  { %4002 = vmatprep.subr.mxu0 %v3598_v5 }
0x15d5   :  { %4003 = vmatpush3.msra.mxu0 %v3598_v5 }
0x15d6   :  { %4004 = vmatprep.subr.mxu0 %v3597_v6 }
0x15d7   :  { %4005 = vmatpush3.msra.mxu0 %v3597_v6 }
0x15d8   :  { %4028 = vmatprep.subr.mxu0 %v4176_v19 }
0x1659   :  { %v3008_v59 = vpop.xlane.xlu0 %3007 }
0x165a   :  { %v3010_v60 = vmul.f32 0.03125, %v3008_v59 }
0x165b   :  { %v3005_v61 = vpop.xlane.xlu1 %3004 }
0x165c   :  { %v3012_v62 = vsub.f32 %v3000_v57, %v3010_v60  ;;  %v3009_v63 = vmul.f32 0.03125, %v3005_v61 }
0x165e   :  { %v3011_v0 = vsub.f32 %v2999_v8, %v3009_v63  ;;  %v3014_v1 = vmul.f32 %v3012_v62, %v3012_v62 }
0x1660   :  { %v3018_v2 = vsel %vm180_vm3, %v3014_v1, 0.0  ;;  %v3013_v3 = vmul.f32 %v3011_v0, %v3011_v0 }
0x1661   :  { %3019 = vadd.xlane.f32.xlu1 %v3018_v2 }
0x1662   :  { %v3015_v28 = vsel %vm180_vm3, %v3013_v3, 0.0 }
0x1663   :  { %3016 = vadd.xlane.f32.xlu0 %v3015_v28 }
0x16ea   :  { %v3020_v24 = vpop.xlane.xlu1 %3019 }
0x16eb   :  { %v3022_v26 = vmul.f32 0.03125, %v3020_v24 }
0x16ec   :  { %v3017_v7 = vpop.xlane.xlu0 %3016 }
0x16ed   :  { %v3024_v10 = vadd.f32 1e-05, %v3022_v26  ;;  %v3021_v11 = vmul.f32 0.03125, %v3017_v7 }
0x16ef   :  { %4154 = vrsqrt.f32 %v3024_v10  ;;  %v3023_v13 = vadd.f32 1e-05, %v3021_v11  ;;  %v3295_v11 = vld [vmem:[%s4806_s6 + $0x18] sm:$0xff] }
0x16f1   :  { %4156 = vrsqrt.f32 %v3023_v13  ;;  %v3294_v13 = vld [vmem:[%s4806_s6 + $0x10] sm:$0xff] }
0x16fc   :  { %v4155_v15 = vpop.eup %4154 }
0x16fd   :  { %v3028_v18 = vmul.f32 %v4155_v15, %v3012_v62  ;;  %v3293_v15 = vld [vmem:[%s4806_s6 + $0x8] sm:$0xff] }
0x16fe   :  { %v4157_v20 = vpop.eup %4156 }
0x16ff   :  { %v3027_v21 = vmul.f32 %v4157_v20, %v3011_v0  ;;  %v3034_v22 = vmul.f32 %v3595_v16, %v3028_v18 }
0x1701   :  { %v3033_v25 = vmul.f32 %v3595_v16, %v3027_v21  ;;  %v3040_v27 = vadd.f32 %v3596_v23, %v3034_v22  ;;  %v3292_v16 = vld [vmem:[%s4806_s6] sm:$0xff] }
0x1703   :  { %v3039_v14 = vadd.f32 %v3596_v23, %v3033_v25 }
0x1705   :  { %4006 = vmatprep.mubr.msk.f32.mxu0 %vm180_vm3, %v3039_v14 }
0x1706   :  { %4007 = vmatmul.mubr.msk.f32.vlgmr.msra.gmra.mxu0 %vm180_vm3, %v3040_v27 }
0x1707   :  { %4036 = vmatprep.mubr.msk.f32.mxu0 %vm4189_vm10, %v4176_v19  ;;  %4029 = vmatpush3.msra.mxu0 %v3295_v11 }
0x1708   :  { %4030 = vmatprep.subr.mxu0 %v4176_v19 }
0x1709   :  { %4031 = vmatpush3.msra.mxu0 %v3294_v13 }
0x170a   :  { %4032 = vmatprep.subr.mxu0 %v4176_v19 }
0x170b   :  { %4033 = vmatpush3.msra.mxu0 %v3293_v15 }
0x170c   :  { %4034 = vmatprep.subr.mxu0 %v4176_v19 }
0x170d   :  { %4035 = vmatpush3.msra.mxu0 %v3292_v16 }
0x170e   :  { %4039 = vmatprep.subr.mxu0 %v4176_v19 }
0x17c6   :  { %v4008_v39 = vpop.f32.mrf.mxu0 }
0x17c7   :  { %v3129_v31 = vadd.f32 %v4008_v39, %v3602_v33 }
0x17c8   :  { %v3123_v40 = vpop.f32.mrf.mxu0 }
0x17c9   :  { %v3133_v41 = vmul.f32 %v3129_v31, %v3129_v31  ;;  %v3124_v42 = vadd.f32 %v3602_v33, %v3123_v40  ;;  %v3377_v40 = vld [vmem:[%s4807_s7 + $0x10] sm:$0xff] }
0x17cb   :  { %v3135_v43 = vmul.f32 %v3133_v41, %v3129_v31  ;;  %v3132_v44 = vmul.f32 %v3124_v42, %v3124_v42  ;;  %v3376_v41 = vld [vmem:[%s4807_s7 + $0x8] sm:$0xff] }
0x17cd   :  { %v3137_v45 = vmul.f32 0.044715, %v3135_v43  ;;  %v3134_v46 = vmul.f32 %v3132_v44, %v3124_v42  ;;  %v3619_v43 = vld [vmem:[%s4806_s6 + $0x20] ss:$0 sm:$0xff] }
0x17cf   :  { %v3139_v47 = vadd.f32 %v3137_v45, %v3129_v31  ;;  %v3136_v48 = vmul.f32 0.044715, %v3134_v46 }
0x17d1   :  { %v3141_v49 = vmul.f32 0.7978846, %v3139_v47  ;;  %v3138_v50 = vadd.f32 %v3136_v48, %v3124_v42  ;;  %v3621_v48 = vld [vmem:[%s4807_s7 + $0x20] ss:$0 sm:$0xff] }
0x17d3   :  { %4158 = vtanh.f32 %v3141_v49  ;;  %v3140_v51 = vmul.f32 0.7978846, %v3138_v50 }
0x17d5   :  { %4160 = vtanh.f32 %v3140_v51 }
0x17e0   :  { %v4159_v52 = vpop.eup %4158 }
0x17e1   :  { %v3145_v53 = vadd.f32 1.0, %v4159_v52 }
0x17e2   :  { %v4161_v54 = vpop.eup %4160 }
0x17e3   :  { %v3144_v55 = vadd.f32 1.0, %v4161_v54  ;;  %v3147_v56 = vmul.f32 0.5, %v3145_v53 }
0x17e5   :  { %v3146_v57 = vmul.f32 0.5, %v3144_v55  ;;  %v3149_v8 = vmul.f32 %v3147_v56, %v3129_v31  ;;  %v3378_v31 = vld [vmem:[%s4807_s7 + $0x18] sm:$0xff] }
0x17e7   :  { %v3148_v9 = vmul.f32 %v3146_v57, %v3124_v42  ;;  %v3375_v42 = vld [vmem:[%s4807_s7] sm:$0xff] }
0x17e9   :  { %4025 = vmatprep.mubr.msk.f32.mxu1 %vm94_vm0, %v3148_v9 }
0x17ea   :  { %4026 = vmatmul.mubr.msk.f32.vlgmr.msra.gmra.mxu1 %vm94_vm0, %v3149_v8  ;;  %v4192_v8 = vmov 2  }
0x17eb   :  { %4072 = vset.pattern.permute.xlu1 %v4192_v8  ;;  %4073 = vset.pattern.permute.xlu0 %v4192_v8 }
0x18aa   :  { %v4027_v59 = vpop.f32.mrf.mxu1 }
0x18ab   :  { %v3242_v60 = vadd.f32 %v4027_v59, %v3614_v58 }
0x18ac   :  { %v3236_v61 = vpop.f32.mrf.mxu1 }
0x18ad   :  { %v3246_v62 = vadd.f32 %v3242_v60, %v3040_v27  ;;  %v3237_v63 = vadd.f32 %v3614_v58, %v3236_v61  ;;  %v3617_v27 = vld [vmem:[%s4801_s1 + $0x52] ss:$0 sm:$0xff] }
0x18af   :  { %v3245_v0 = vadd.f32 %v3237_v63, %v3039_v14  ;;  %v3252_v1 = vsel %vm180_vm3, %v3246_v62, 0.0 }
0x18b0   :  { %3253 = vadd.xlane.f32.xlu0 %v3252_v1 }
0x18b1   :  { %v3249_v2 = vsel %vm180_vm3, %v3245_v0, 0.0 }
0x18b2   :  { %3250 = vadd.xlane.f32.xlu1 %v3249_v2 }
0x1939   :  { %v3254_v3 = vpop.xlane.xlu0 %3253 }
0x193a   :  { %v3256_v28 = vmul.f32 0.03125, %v3254_v3 }
0x193b   :  { %v3251_v12 = vpop.xlane.xlu1 %3250 }
0x193c   :  { %v3258_v4 = vsub.f32 %v3246_v62, %v3256_v28  ;;  %v3255_v5 = vmul.f32 0.03125, %v3251_v12 }
0x193e   :  { %v3257_v6 = vsub.f32 %v3245_v0, %v3255_v5  ;;  %v3260_v24 = vmul.f32 %v3258_v4, %v3258_v4 }
0x1940   :  { %v3264_v26 = vsel %vm180_vm3, %v3260_v24, 0.0  ;;  %v3259_v7 = vmul.f32 %v3257_v6, %v3257_v6 }
0x1941   :  { %3265 = vadd.xlane.f32.xlu0 %v3264_v26 }
0x1942   :  { %v3261_v10 = vsel %vm180_vm3, %v3259_v7, 0.0 }
0x1943   :  { %3262 = vadd.xlane.f32.xlu1 %v3261_v10 }
0x19ca   :  { %v3266_v18 = vpop.xlane.xlu0 %3265 }
0x19cb   :  { %v3268_v20 = vmul.f32 0.03125, %v3266_v18 }
0x19cc   :  { %v3263_v21 = vpop.xlane.xlu1 %3262 }
0x19cd   :  { %v3270_v22 = vadd.f32 1e-05, %v3268_v20  ;;  %v3267_v23 = vmul.f32 0.03125, %v3263_v21 }
0x19cf   :  { %4162 = vrsqrt.f32 %v3270_v22  ;;  %v3269_v25 = vadd.f32 1e-05, %v3267_v23 }
0x19d1   :  { %4164 = vrsqrt.f32 %v3269_v25 }
0x19dc   :  { %v4163_v14 = vpop.eup %4162 }
0x19dd   :  { %v3274_v29 = vmul.f32 %v4163_v14, %v3258_v4 }
0x19de   :  { %v4165_v30 = vpop.eup %4164 }
0x19df   :  { %v3273_v34 = vmul.f32 %v4165_v30, %v3257_v6  ;;  %v3280_v35 = vmul.f32 %v3617_v27, %v3274_v29 }
0x19e1   :  { %v3279_v36 = vmul.f32 %v3617_v27, %v3273_v34  ;;  %v3286_v37 = vadd.f32 %v3618_v32, %v3280_v35 }
0x19e3   :  { %v3285_v38 = vadd.f32 %v3618_v32, %v3279_v36  ;;  %v3288_v33 = vrot.slane %v3286_v37, 7 }
0x19e5   :  { %v3291_v39 = vsel %vm3290_vm11, %v3285_v38, %v3288_v33 }
0x19e6   :  { %4037 = vmatmul.mubr.msk.f32.vlgmr.msra.gmra.mxu0 %vm180_vm3, %v3291_v39 }
0x19e7   :  { %4047 = vmatprep.mubr.msk.f32.mxu0 %vm4189_vm10, %v4176_v19  ;;  %4040 = vmatpush3.msra.mxu0 %v3378_v31 }
0x19e8   :  { %4041 = vmatprep.subr.mxu0 %v4176_v19 }
0x19e9   :  { %4042 = vmatpush3.msra.mxu0 %v3377_v40 }
0x19ea   :  { %4043 = vmatprep.subr.mxu0 %v4176_v19 }
0x19eb   :  { %4044 = vmatpush3.msra.mxu0 %v3376_v41 }
0x19ec   :  { %4045 = vmatprep.subr.mxu0 %v4176_v19 }
0x19ed   :  { %4046 = vmatpush3.msra.mxu0 %v3375_v42 }
0x1aa6   :  { %v3370_v44 = vpop.f32.mrf.mxu0 }
0x1aa7   :  { %v3371_v45 = vadd.f32 %v3619_v43, %v3370_v44 }
0x1aa8   :  { %v4038_v46 = vpop.f32.mrf.mxu0 }
0x1aa9   :  { %4166 = vtanh.f32 %v3371_v45 }
0x1ab6   :  { %v4167_v47 = vpop.eup %4166 }
0x1ab7   :  { %4048 = vmatmul.mubr.msk.f32.vlgmr.msra.gmra.mxu0 %vm180_vm3, %v4167_v47 }
0x1b77   :  { %v3453_v49 = vpop.f32.mrf.mxu0 }
0x1b78   :  { %v3454_v50 = vadd.f32 %v3621_v48, %v3453_v49 }
0x1b79   :  { %v4049_v51 = vpop.f32.mrf.mxu0 }
0x1b7a   :  { %3458 = vrot.lane.b32.xlu0 %v3454_v50, %s4190_s0 }
0x1bec   :  { %v3459_v19 = vpop.permute.xlu0 %3458 }
0x1bed   :  { %v3461_v52 = vmax.f32 %v3454_v50, %v3459_v19 }
0x1bef   :  { %3466 = vrot.lane.b32.xlu1 %v3461_v52, %s4191_s18  ;;  %v3462_v57 = vsub.f32 %v3454_v50, %v3461_v52 }
0x1bf1   :  { %v3463_v9 = vmul.f32 1.442695, %v3462_v57 }
0x1c61   :  { %v3467_v53 = vpop.permute.xlu1 %3466 }
0x1c62   :  { %v3469_v54 = vsub.f32 %v3454_v50, %v3467_v53 }
0x1c64   :  { %v3470_v55 = vmul.f32 1.442695, %v3469_v54 }
0x1c66   :  { %4168 = vpow2.f32 %v3470_v55 }
0x1c67   :  { %4170 = vpow2.f32 %v3463_v9 }
0x1c73   :  { %v4169_v56 = vpop.eup %4168 }
0x1c74   :  { %3473 = vrot.lane.b32.xlu1 %v4169_v56, %s4190_s0  ;;  %v4171_v58 = vpop.eup %4170 }
0x1ce6   :  { %v3474_v59 = vpop.permute.xlu1 %3473 }
0x1ce7   :  { %v3476_v60 = vadd.f32 %v4171_v58, %v3474_v59 }
0x1ce9   :  { %3478 = vrot.lane.b32.xlu0 %v3476_v60, %s4191_s18 }
0x1d5b   :  { %v3479_v61 = vpop.permute.xlu0 %3478 }
0x1d5c   :  { %4172 = vrcp.f32 %v3479_v61 }
0x1d69   :  { %v4173_v62 = vpop.eup %4172 }
0x1d6a   :  { %v3482_v63 = vmul.f32 %v4173_v62, %v4169_v56 }
0x1d6c   :  { %3486 = vperm.xlu1 %4072, %v3482_v63  }
0x1de7   :  { %v3487_v0 = vpop.permute.xlu1 %3486 }
0x1de8   :  { %v3489_v1 = vsel %vm3483_vm12, %v3487_v0, %v3454_v50 }
0x1de9   :  { %3490 = vst [vmem:[%s4808_s8] sm:$0x3] %v3489_v1 }

</bundles_post_ra>
